<compile_context>
chip_gen: v6e
topology: v6e:2x2x1
jax: 0.10.0
libtpu: 0.0.40
codegen_flags: <defaults>
</compile_context>

<pallas_src>
import math

import jax
import jax.numpy as jnp
import numpy as np
from jax import lax
from jax.experimental import pallas as pl
from jax.experimental.pallas import tpu as pltpu

# ----------------------------- configuration --------------------------------
X_DIM = 1
Y_DIM = 1
C_DIM = 8
N_BINS = 8
HIDDEN = 32
N_HIDDEN_LAYERS = 3
TAIL_BOUND = 5.0
MIN_BIN_WIDTH = 1e-3
MIN_BIN_HEIGHT = 1e-3
MIN_DERIVATIVE = 1e-3
# softplus(DERIV_PAD_CONST) + MIN_DERIVATIVE == 1.0  (boundary derivative of 1)
DERIV_PAD_CONST = math.log(math.exp(1.0 - MIN_DERIVATIVE) - 1.0)


# ------------------------------ kernel helpers -------------------------------
def _softplus(x):
    return jnp.maximum(x, 0.0) + jnp.log1p(jnp.exp(-jnp.abs(x)))


def _fast_recip(x):
    # EUP approximate reciprocal seed + one Newton step: ~f32 accuracy while
    # keeping the divide off the (saturated) VPU slot.
    r = pl.reciprocal(x, approx=True)
    return r * (2.0 - x * r)


# --------------------------------- kernel ------------------------------------
def rqs_kernel(y_ref, c_ref,
               w0_ref, b0_ref, w1_ref, b1_ref, w2_ref, b2_ref,
               wo_ref, bo_ref, tri2_ref,
               yout_ref, lad_ref):
    """Transposed layout: batch on lanes.

    y_ref:    (1, L)        c_ref: (C, L)
    wK_ref:   (H, in)       bK_ref: (H, 1)        (already transposed)
    wo_ref:   (3*nb, H)     bo_ref: (3*nb, 1)     (head padded to 3*nb rows)
    tri2_ref: (2*nb, nb)    [strict-lower-tri ; lower-tri]  (cumsum operator)
    yout_ref, lad_ref: (1, L)
    """
    nb = N_BINS
    left = -TAIL_BOUND
    right = TAIL_BOUND
    span = right - left

    y = y_ref[...]                       # (1, L)
    ctx = c_ref[...]                     # (C, L)

    # ---------------- MLP (f32 MXU; K is tiny so MXU is never the bottleneck) -
    h = jnp.maximum(jnp.dot(w0_ref[...], ctx, preferred_element_type=jnp.float32) + b0_ref[...], 0.0)
    h = jnp.maximum(jnp.dot(w1_ref[...], h, preferred_element_type=jnp.float32) + b1_ref[...], 0.0)
    h = jnp.maximum(jnp.dot(w2_ref[...], h, preferred_element_type=jnp.float32) + b2_ref[...], 0.0)
    p = jnp.dot(wo_ref[...], h, preferred_element_type=jnp.float32) + bo_ref[...]   # (3*nb, L)

    uw = p[0:nb, :]                      # (nb, L)  unnormalized widths
    uh = p[nb:2 * nb, :]                 # (nb, L)  unnormalized heights
    udp = p[2 * nb:3 * nb, :]            # (nb, L)  unnormalized derivs (+ zero pad row)

    # ---------------- per-axis softmax over bins (sublane axis) --------------
    def bin_sizes(u, min_size):
        m = jnp.max(u, axis=0, keepdims=True)
        e = jnp.exp(u - m)
        inv = _fast_recip(jnp.sum(e, axis=0, keepdims=True))   # one recip per column
        return min_size + (1.0 - min_size * nb) * (e * inv)

    widths = bin_sizes(uw, MIN_BIN_WIDTH)        # (nb, L)
    heights = bin_sizes(uh, MIN_BIN_HEIGHT)      # (nb, L)

    # Both cumulative sums from one matmul per axis:
    #   rows 0..nb-1   -> strict-lower cumsum  = left  knot of bin j (row 0 == 0)
    #   rows nb..2nb-1 -> lower cumsum         = right knot of bin j
    cum_x = jnp.dot(tri2_ref[...], widths, preferred_element_type=jnp.float32)    # (2nb, L)
    cum_y = jnp.dot(tri2_ref[...], heights, preferred_element_type=jnp.float32)   # (2nb, L)

    rows16 = lax.broadcasted_iota(jnp.int32, (2 * nb, 1), 0).astype(jnp.float32)
    force_last = rows16 == float(2 * nb - 1)     # only the last knot is forced to +tb
    knot_x = jnp.where(force_last, right, span * cum_x + left)    # (2nb, L)
    knot_y = jnp.where(force_last, right, span * cum_y + left)

    knot_x_lo = knot_x[0:nb, :]          # left  x-knot of bin j   (row 0 == left exactly)
    knot_x_hi = knot_x[nb:2 * nb, :]     # right x-knot of bin j   (row nb-1 == right)
    knot_y_lo = knot_y[0:nb, :]
    knot_y_hi = knot_y[nb:2 * nb, :]

    # ---------------- bin search (inverse: search the height knots) ----------
    inside = jnp.logical_and(y >= left, y <= right)      # (1, L)
    y_c = jnp.clip(y, left, right)

    rows8 = lax.broadcasted_iota(jnp.int32, (nb, 1), 0).astype(jnp.float32)
    is_interior = rows8 < float(nb - 1)
    is_ge = jnp.logical_and(y_c >= knot_y_hi, is_interior)
    bin_idx = jnp.sum(is_ge.astype(jnp.float32), axis=0, keepdims=True)   # (1, L) in [0, nb-1]

    # one-hot gather masks, computed once and reused for all gathers
    onehot_hi = (rows8 == bin_idx).astype(jnp.float32)           # (nb, L)
    onehot_lo = (rows8 == bin_idx - 1.0).astype(jnp.float32)     # all-zero row when bin==0

    def gather(arr, oh):                  # (nb, L) -> (1, L)
        return jnp.sum(oh * arr, axis=0, keepdims=True)

    x_lo = gather(knot_x_lo, onehot_hi)
    x_hi = gather(knot_x_hi, onehot_hi)
    yk_lo = gather(knot_y_lo, onehot_hi)
    yk_hi = gather(knot_y_hi, onehot_hi)
    d_lo_raw = gather(udp, onehot_lo)     # udp[bin-1]; 0 when bin==0   (fixed below)
    d_hi_raw = gather(udp, onehot_hi)     # udp[bin];   pad row at bin==nb-1 (fixed below)

    # softplus only on the two gathered rows, packed as (2, L); boundary derivs == 1
    d_raw2 = jnp.concatenate([d_lo_raw, d_hi_raw], axis=0)                   # (2, L)
    edge2 = lax.broadcasted_iota(jnp.int32, (2, 1), 0).astype(jnp.float32) * float(nb - 1)
    d2 = jnp.where(bin_idx == edge2, 1.0, MIN_DERIVATIVE + _softplus(d_raw2))
    d_lo = d2[0:1, :]
    d_hi = d2[1:2, :]

    # ---------------- inverse rational quadratic spline ----------------------
    in_w = x_hi - x_lo
    in_h = yk_hi - yk_lo
    delta = in_h * _fast_recip(in_w)

    dy = y_c - yk_lo
    s = d_lo + d_hi - 2.0 * delta
    dys = dy * s
    hdlo = in_h * d_lo
    a = dys + in_h * delta - hdlo
    b = hdlo - dys
    c = -delta * dy
    disc = jnp.maximum(b * b - 4.0 * a * c, 0.0)
    root = (2.0 * c) / (-b - jnp.sqrt(disc))          # exact divide: returned value
    out_spline = root * in_w + x_lo

    one_m_root = 1.0 - root
    t1mt = root * one_m_root
    den = delta + s * t1mt
    dnum = (delta * delta) * (d_hi * root * root + 2.0 * delta * t1mt
                              + d_lo * one_m_root * one_m_root)
    # logabsdet = -(log(dnum) - 2*log(den)) = log(den^2 / dnum)   (single log)
    lad_spline = jnp.log(den * den * _fast_recip(dnum))

    # linear tails: identity / zero log-det outside [-tail_bound, tail_bound]
    yout_ref[...] = jnp.where(inside, out_spline, y)
    lad_ref[...] = jnp.where(inside, lad_spline, 0.0)


# --------------------------------- wrapper -----------------------------------
def rqs_forward(y, context, params, *, b_tile=8192):
    """y: (B, 1), context: (B, c_dim).  Returns (Y_out (B,1), logabsdet (B,))."""
    B = y.shape[0]
    nb = N_BINS
    (w0, b0), (w1, b1), (w2, b2), (wout, bout) = params
    f32 = jnp.float32

    # ---- tile / grid sizing --------------------------------------------------
    bt_cfg = max(128, (int(b_tile) // 128) * 128)         # requested lane tile
    Bp_min = ((B + 127) // 128) * 128                     # batch padded to lanes
    steps = max(1, -(-Bp_min // bt_cfg))
    if steps == 1 and Bp_min >= 256:
        steps = 2          # >=2 grid steps so both v7x TensorCores get work
    bt = -(-Bp_min // steps)                              # ceil
    bt = ((bt + 127) // 128) * 128                        # lane multiple
    Bp = steps * bt
    grid = (steps,)

    # transposed, padded inputs: batch on lanes.
    # NOTE: this is one small fused XLA pad+transpose pass over ~(C+1)*B floats;
    # feed context/y already transposed (C, B) upstream to remove it entirely.
    y_t = jnp.pad(jnp.transpose(y.astype(f32)), ((0, 0), (0, Bp - B)))        # (1, Bp)
    c_t = jnp.pad(jnp.transpose(context.astype(f32)), ((0, 0), (0, Bp - B)))  # (C, Bp)

    w0_t, b0_t = w0.astype(f32).T, b0.astype(f32).reshape(-1, 1)
    w1_t, b1_t = w1.astype(f32).T, b1.astype(f32).reshape(-1, 1)
    w2_t, b2_t = w2.astype(f32).T, b2.astype(f32).reshape(-1, 1)
    # fused head, padded from 3*nb-1 to 3*nb rows (zero weights/bias) so all
    # in-kernel sublane slices are 8-row aligned
    wo_t = jnp.pad(wout.astype(f32).T, ((0, 1), (0, 0)))                # (3*nb, HIDDEN)
    bo_t = jnp.pad(bout.astype(f32).reshape(-1, 1), ((0, 1), (0, 0)))   # (3*nb, 1)

    # [strict-lower-tri ; lower-tri]: one matmul yields both cumsums (lo/hi knots)
    tri2 = jnp.asarray(np.concatenate(
        [np.tril(np.ones((nb, nb), np.float32), k=-1),
         np.tril(np.ones((nb, nb), np.float32))], axis=0))              # (2*nb, nb)

    def tile_spec(rows):
        return pl.BlockSpec((rows, bt), lambda i: (0, i))

    def full_spec(shape):
        return pl.BlockSpec(shape, lambda i: (0, 0))

    in_specs = [
        tile_spec(1),                        # y
        tile_spec(C_DIM),                    # context
        full_spec(w0_t.shape), full_spec(b0_t.shape),
        full_spec(w1_t.shape), full_spec(b1_t.shape),
        full_spec(w2_t.shape), full_spec(b2_t.shape),
        full_spec(wo_t.shape), full_spec(bo_t.shape),
        full_spec(tri2.shape),
    ]
    out_specs = (tile_spec(1), tile_spec(1))
    out_shape = (jax.ShapeDtypeStruct((1, Bp), f32),
                 jax.ShapeDtypeStruct((1, Bp), f32))

    # VMEM budget sized from the per-tile working set (pipeline buffers + temps),
    # with headroom, instead of a blanket 32 MiB.
    vmem_limit = int(min(64 * 2**20, max(8 * 2**20, 4 * 2**20 + 2048 * bt)))

    y_out_t, lad_t = pl.pallas_call(
        rqs_kernel,
        grid=grid,
        in_specs=in_specs,
        out_specs=out_specs,
        out_shape=out_shape,
        compiler_params=pltpu.CompilerParams(
            dimension_semantics=("parallel",),
            vmem_limit_bytes=vmem_limit),
    )(y_t, c_t, w0_t, b0_t, w1_t, b1_t, w2_t, b2_t, wo_t, bo_t, tri2)

    return jnp.transpose(y_out_t[:, :B]), lad_t[0, :B]


# ------------------------- pure-JAX reference (check) ------------------------
def ref_forward(y, context, params):
    (w0, b0), (w1, b1), (w2, b2), (wout, bout) = params
    hp = lax.Precision.HIGHEST
    h = jnp.maximum(jnp.dot(context, w0, precision=hp) + b0, 0.0)
    h = jnp.maximum(jnp.dot(h, w1, precision=hp) + b1, 0.0)
    h = jnp.maximum(jnp.dot(h, w2, precision=hp) + b2, 0.0)
    out = jnp.dot(h, wout, precision=hp) + bout
    nb = N_BINS
    uw, uh, ud = out[:, :nb], out[:, nb:2 * nb], out[:, 2 * nb:]

    x = y[:, 0]
    tb = TAIL_BOUND
    B = x.shape[0]
    inside = (x >= -tb) & (x <= tb)

    ud_full = jnp.concatenate(
        [jnp.full((B, 1), DERIV_PAD_CONST), ud, jnp.full((B, 1), DERIV_PAD_CONST)], axis=-1)

    widths = MIN_BIN_WIDTH + (1 - MIN_BIN_WIDTH * nb) * jax.nn.softmax(uw, axis=-1)
    cumw = jnp.concatenate([jnp.zeros((B, 1)), jnp.cumsum(widths, -1)], -1)
    cumw = 2 * tb * cumw - tb
    cumw = cumw.at[:, 0].set(-tb).at[:, -1].set(tb)
    widths = cumw[:, 1:] - cumw[:, :-1]

    derivs = MIN_DERIVATIVE + jax.nn.softplus(ud_full)

    heights = MIN_BIN_HEIGHT + (1 - MIN_BIN_HEIGHT * nb) * jax.nn.softmax(uh, axis=-1)
    cumh = jnp.concatenate([jnp.zeros((B, 1)), jnp.cumsum(heights, -1)], -1)
    cumh = 2 * tb * cumh - tb
    cumh = cumh.at[:, 0].set(-tb).at[:, -1].set(tb)
    heights = cumh[:, 1:] - cumh[:, :-1]

    xc = jnp.clip(x, -tb, tb)
    bin_loc = cumh.at[:, -1].add(1e-6)
    bin_idx = jnp.sum((xc[:, None] >= bin_loc).astype(jnp.int32), -1) - 1
    bin_idx = jnp.clip(bin_idx, 0, nb - 1)
    take = lambda a: jnp.take_along_axis(a, bin_idx[:, None], axis=-1)[:, 0]

    in_cw, in_w, in_ch = take(cumw), take(widths), take(cumh)
    in_delta = take(heights / widths)
    in_d, in_dp1, in_h = take(derivs), take(derivs[:, 1:]), take(heights)

    s = in_d + in_dp1 - 2 * in_delta
    a = (xc - in_ch) * s + in_h * (in_delta - in_d)
    b = in_h * in_d - (xc - in_ch) * s
    c = -in_delta * (xc - in_ch)
    root = (2 * c) / (-b - jnp.sqrt(b * b - 4 * a * c))
    out_y = root * in_w + in_cw
    t1mt = root * (1 - root)
    denom = in_delta + s * t1mt
    dnum = in_delta ** 2 * (in_dp1 * root ** 2 + 2 * in_delta * t1mt + in_d * (1 - root) ** 2)
    lad = -(jnp.log(dnum) - 2 * jnp.log(denom))

    out_y = jnp.where(inside, out_y, x)
    lad = jnp.where(inside, lad, 0.0)
    return out_y[:, None], lad


# ----------------------------------- main ------------------------------------
def make_params(key):
    dims = [C_DIM] + [HIDDEN] * N_HIDDEN_LAYERS
    params = []
    for fan_in, fan_out in zip(dims[:-1], dims[1:]):
        key, kw, kb = jax.random.split(key, 3)
        W = jax.random.normal(kw, (fan_in, fan_out), jnp.float32) / jnp.sqrt(fan_in)
        b = 0.1 * jax.random.normal(kb, (1, fan_out), jnp.float32)
        params.append((W, b))
    # final layer kept fused: the three heads are sliced inside the kernel
    dim_out = 3 * N_BINS - 1
    key, kw, kb = jax.random.split(key, 3)
    Wout = jax.random.normal(kw, (HIDDEN, dim_out), jnp.float32) / jnp.sqrt(HIDDEN)
    bout = 0.1 * jax.random.normal(kb, (1, dim_out), jnp.float32)
    params.append((Wout, bout))
    return tuple(params)


if __name__ == "__main__":
    key = jax.random.PRNGKey(0)
    kp, ky, kc = jax.random.split(key, 3)

    params = make_params(kp)

    # batch deliberately not a multiple of the 128-lane tile to exercise padding;
    # the wrapper's sizing rule gives a 2-step "parallel" grid here.
    B = 1000
    Y = jax.random.uniform(ky, (B, Y_DIM), jnp.float32, minval=-7.0, maxval=7.0)
    context = jax.random.normal(kc, (B, C_DIM), jnp.float32)

    fwd = jax.jit(rqs_forward)
    y_out, logabsdet = fwd(Y, context, params)
    jax.block_until_ready((y_out, logabsdet))

    y_ref, lad_ref = ref_forward(Y, context, params)
    np.testing.assert_allclose(np.asarray(y_out), np.asarray(y_ref), rtol=1e-3, atol=1e-3)
    np.testing.assert_allclose(np.asarray(logabsdet), np.asarray(lad_ref), rtol=1e-3, atol=1e-3)

    print("KERNEL_OK")
</pallas_src>

<mosaic_0001>
module attributes {stable_mosaic.version = 11 : i64} {
  func.func @rqs_kernel(%arg0: i32, %arg1: memref<1x512xf32, #tpu.memory_space<vmem>>, %arg2: memref<8x512xf32, #tpu.memory_space<vmem>>, %arg3: memref<32x8xf32, #tpu.memory_space<vmem>>, %arg4: memref<32x1xf32, #tpu.memory_space<vmem>>, %arg5: memref<32x32xf32, #tpu.memory_space<vmem>>, %arg6: memref<32x1xf32, #tpu.memory_space<vmem>>, %arg7: memref<32x32xf32, #tpu.memory_space<vmem>>, %arg8: memref<32x1xf32, #tpu.memory_space<vmem>>, %arg9: memref<24x32xf32, #tpu.memory_space<vmem>>, %arg10: memref<24x1xf32, #tpu.memory_space<vmem>>, %arg11: memref<16x8xf32, #tpu.memory_space<vmem>>, %arg12: memref<1x512xf32, #tpu.memory_space<vmem>>, %arg13: memref<1x512xf32, #tpu.memory_space<vmem>>) attributes {dimension_semantics = [#tpu.dimension_semantics<parallel>], iteration_bounds = array<i64: 2>, scalar_prefetch = 0 : i64, scratch_operands = 0 : i64, tpu.core_type = #tpu.core_type<tc>, window_params = [{transform_indices = @transform_0, window_bounds = array<i64: 1, 512>}, {transform_indices = @transform_1, window_bounds = array<i64: 8, 512>}, {pipeline_mode = #tpu.pipeline_mode<synchronous>, transform_indices = @transform_2, window_bounds = array<i64: 32, 8>}, {pipeline_mode = #tpu.pipeline_mode<synchronous>, transform_indices = @transform_3, window_bounds = array<i64: 32, 1>}, {pipeline_mode = #tpu.pipeline_mode<synchronous>, transform_indices = @transform_4, window_bounds = array<i64: 32, 32>}, {pipeline_mode = #tpu.pipeline_mode<synchronous>, transform_indices = @transform_5, window_bounds = array<i64: 32, 1>}, {pipeline_mode = #tpu.pipeline_mode<synchronous>, transform_indices = @transform_6, window_bounds = array<i64: 32, 32>}, {pipeline_mode = #tpu.pipeline_mode<synchronous>, transform_indices = @transform_7, window_bounds = array<i64: 32, 1>}, {pipeline_mode = #tpu.pipeline_mode<synchronous>, transform_indices = @transform_8, window_bounds = array<i64: 24, 32>}, {pipeline_mode = #tpu.pipeline_mode<synchronous>, transform_indices = @transform_9, window_bounds = array<i64: 24, 1>}, {pipeline_mode = #tpu.pipeline_mode<synchronous>, transform_indices = @transform_10, window_bounds = array<i64: 16, 8>}, {transform_indices = @transform_11, window_bounds = array<i64: 1, 512>}, {transform_indices = @transform_12, window_bounds = array<i64: 1, 512>}]} {
    %c0 = arith.constant 0 : index
    %c0_0 = arith.constant 0 : index
    %0 = vector.load %arg1[%c0, %c0_0] : memref<1x512xf32, #tpu.memory_space<vmem>>, vector<1x512xf32>
    %c0_1 = arith.constant 0 : index
    %c0_2 = arith.constant 0 : index
    %1 = vector.load %arg2[%c0_1, %c0_2] : memref<8x512xf32, #tpu.memory_space<vmem>>, vector<8x512xf32>
    %c0_3 = arith.constant 0 : index
    %c0_4 = arith.constant 0 : index
    %2 = vector.load %arg3[%c0_3, %c0_4] : memref<32x8xf32, #tpu.memory_space<vmem>>, vector<32x8xf32>
    %cst = arith.constant dense<0.000000e+00> : vector<32x512xf32>
    %3 = tpu.matmul %2, %1, %cst {dimension_numbers = #tpu.dot_dimension_numbers<[1], [0], [0], [1], [0, 0, 1, 1], [], []>} : vector<32x8xf32>, vector<8x512xf32>, vector<32x512xf32> -> vector<32x512xf32>
    %c0_5 = arith.constant 0 : index
    %c0_6 = arith.constant 0 : index
    %4 = vector.load %arg4[%c0_5, %c0_6] : memref<32x1xf32, #tpu.memory_space<vmem>>, vector<32x1xf32>
    %5 = vector.broadcast %4 : vector<32x1xf32> to vector<32x512xf32>
    %6 = arith.addf %3, %5 : vector<32x512xf32>
    %cst_7 = arith.constant 0.000000e+00 : f32
    %7 = vector.broadcast %cst_7 : f32 to vector<32x512xf32>
    %8 = arith.maximumf %6, %7 : vector<32x512xf32>
    %c0_8 = arith.constant 0 : index
    %c0_9 = arith.constant 0 : index
    %9 = vector.load %arg5[%c0_8, %c0_9] : memref<32x32xf32, #tpu.memory_space<vmem>>, vector<32x32xf32>
    %cst_10 = arith.constant dense<0.000000e+00> : vector<32x512xf32>
    %10 = tpu.matmul %9, %8, %cst_10 {dimension_numbers = #tpu.dot_dimension_numbers<[1], [0], [0], [1], [0, 0, 1, 1], [], []>} : vector<32x32xf32>, vector<32x512xf32>, vector<32x512xf32> -> vector<32x512xf32>
    %c0_11 = arith.constant 0 : index
    %c0_12 = arith.constant 0 : index
    %11 = vector.load %arg6[%c0_11, %c0_12] : memref<32x1xf32, #tpu.memory_space<vmem>>, vector<32x1xf32>
    %12 = vector.broadcast %11 : vector<32x1xf32> to vector<32x512xf32>
    %13 = arith.addf %10, %12 : vector<32x512xf32>
    %cst_13 = arith.constant 0.000000e+00 : f32
    %14 = vector.broadcast %cst_13 : f32 to vector<32x512xf32>
    %15 = arith.maximumf %13, %14 : vector<32x512xf32>
    %c0_14 = arith.constant 0 : index
    %c0_15 = arith.constant 0 : index
    %16 = vector.load %arg7[%c0_14, %c0_15] : memref<32x32xf32, #tpu.memory_space<vmem>>, vector<32x32xf32>
    %cst_16 = arith.constant dense<0.000000e+00> : vector<32x512xf32>
    %17 = tpu.matmul %16, %15, %cst_16 {dimension_numbers = #tpu.dot_dimension_numbers<[1], [0], [0], [1], [0, 0, 1, 1], [], []>} : vector<32x32xf32>, vector<32x512xf32>, vector<32x512xf32> -> vector<32x512xf32>
    %c0_17 = arith.constant 0 : index
    %c0_18 = arith.constant 0 : index
    %18 = vector.load %arg8[%c0_17, %c0_18] : memref<32x1xf32, #tpu.memory_space<vmem>>, vector<32x1xf32>
    %19 = vector.broadcast %18 : vector<32x1xf32> to vector<32x512xf32>
    %20 = arith.addf %17, %19 : vector<32x512xf32>
    %cst_19 = arith.constant 0.000000e+00 : f32
    %21 = vector.broadcast %cst_19 : f32 to vector<32x512xf32>
    %22 = arith.maximumf %20, %21 : vector<32x512xf32>
    %c0_20 = arith.constant 0 : index
    %c0_21 = arith.constant 0 : index
    %23 = vector.load %arg9[%c0_20, %c0_21] : memref<24x32xf32, #tpu.memory_space<vmem>>, vector<24x32xf32>
    %cst_22 = arith.constant dense<0.000000e+00> : vector<24x512xf32>
    %24 = tpu.matmul %23, %22, %cst_22 {dimension_numbers = #tpu.dot_dimension_numbers<[1], [0], [0], [1], [0, 0, 1, 1], [], []>} : vector<24x32xf32>, vector<32x512xf32>, vector<24x512xf32> -> vector<24x512xf32>
    %c0_23 = arith.constant 0 : index
    %c0_24 = arith.constant 0 : index
    %25 = vector.load %arg10[%c0_23, %c0_24] : memref<24x1xf32, #tpu.memory_space<vmem>>, vector<24x1xf32>
    %26 = vector.broadcast %25 : vector<24x1xf32> to vector<24x512xf32>
    %27 = arith.addf %24, %26 : vector<24x512xf32>
    %28 = vector.extract_strided_slice %27 {offsets = [0, 0], sizes = [8, 512], strides = [1, 1]} : vector<24x512xf32> to vector<8x512xf32>
    %29 = vector.extract_strided_slice %27 {offsets = [8, 0], sizes = [8, 512], strides = [1, 1]} : vector<24x512xf32> to vector<8x512xf32>
    %30 = vector.extract_strided_slice %27 {offsets = [16, 0], sizes = [8, 512], strides = [1, 1]} : vector<24x512xf32> to vector<8x512xf32>
    %cst_25 = arith.constant dense<0xFF800000> : vector<512xf32>
    %31 = vector.multi_reduction <maximumf>, %28, %cst_25 [0] : vector<8x512xf32> to vector<512xf32>
    %32 = vector.shape_cast %31 : vector<512xf32> to vector<1x512xf32>
    %33 = vector.broadcast %32 : vector<1x512xf32> to vector<8x512xf32>
    %34 = arith.subf %28, %33 : vector<8x512xf32>
    %35 = math.exp %34 : vector<8x512xf32>
    %cst_26 = arith.constant dense<0.000000e+00> : vector<512xf32>
    %36 = vector.multi_reduction <add>, %35, %cst_26 [0] : vector<8x512xf32> to vector<512xf32>
    %37 = vector.shape_cast %36 : vector<512xf32> to vector<1x512xf32>
    %38 = tpu.reciprocal %37 {approx = true} : vector<1x512xf32> -> vector<1x512xf32>
    %39 = arith.mulf %37, %38 : vector<1x512xf32>
    %cst_27 = arith.constant 2.000000e+00 : f32
    %40 = vector.broadcast %cst_27 : f32 to vector<1x512xf32>
    %41 = arith.subf %40, %39 : vector<1x512xf32>
    %42 = arith.mulf %38, %41 : vector<1x512xf32>
    %43 = vector.broadcast %42 : vector<1x512xf32> to vector<8x512xf32>
    %44 = arith.mulf %35, %43 : vector<8x512xf32>
    %cst_28 = arith.constant 0.991999983 : f32
    %45 = vector.broadcast %cst_28 : f32 to vector<8x512xf32>
    %46 = arith.mulf %45, %44 : vector<8x512xf32>
    %cst_29 = arith.constant 1.000000e-03 : f32
    %47 = vector.broadcast %cst_29 : f32 to vector<8x512xf32>
    %48 = arith.addf %47, %46 : vector<8x512xf32>
    %cst_30 = arith.constant dense<0xFF800000> : vector<512xf32>
    %49 = vector.multi_reduction <maximumf>, %29, %cst_30 [0] : vector<8x512xf32> to vector<512xf32>
    %50 = vector.shape_cast %49 : vector<512xf32> to vector<1x512xf32>
    %51 = vector.broadcast %50 : vector<1x512xf32> to vector<8x512xf32>
    %52 = arith.subf %29, %51 : vector<8x512xf32>
    %53 = math.exp %52 : vector<8x512xf32>
    %cst_31 = arith.constant dense<0.000000e+00> : vector<512xf32>
    %54 = vector.multi_reduction <add>, %53, %cst_31 [0] : vector<8x512xf32> to vector<512xf32>
    %55 = vector.shape_cast %54 : vector<512xf32> to vector<1x512xf32>
    %56 = tpu.reciprocal %55 {approx = true} : vector<1x512xf32> -> vector<1x512xf32>
    %57 = arith.mulf %55, %56 : vector<1x512xf32>
    %cst_32 = arith.constant 2.000000e+00 : f32
    %58 = vector.broadcast %cst_32 : f32 to vector<1x512xf32>
    %59 = arith.subf %58, %57 : vector<1x512xf32>
    %60 = arith.mulf %56, %59 : vector<1x512xf32>
    %61 = vector.broadcast %60 : vector<1x512xf32> to vector<8x512xf32>
    %62 = arith.mulf %53, %61 : vector<8x512xf32>
    %cst_33 = arith.constant 0.991999983 : f32
    %63 = vector.broadcast %cst_33 : f32 to vector<8x512xf32>
    %64 = arith.mulf %63, %62 : vector<8x512xf32>
    %cst_34 = arith.constant 1.000000e-03 : f32
    %65 = vector.broadcast %cst_34 : f32 to vector<8x512xf32>
    %66 = arith.addf %65, %64 : vector<8x512xf32>
    %c0_35 = arith.constant 0 : index
    %c0_36 = arith.constant 0 : index
    %67 = vector.load %arg11[%c0_35, %c0_36] : memref<16x8xf32, #tpu.memory_space<vmem>>, vector<16x8xf32>
    %cst_37 = arith.constant dense<0.000000e+00> : vector<16x512xf32>
    %68 = tpu.matmul %67, %48, %cst_37 {dimension_numbers = #tpu.dot_dimension_numbers<[1], [0], [0], [1], [0, 0, 1, 1], [], []>} : vector<16x8xf32>, vector<8x512xf32>, vector<16x512xf32> -> vector<16x512xf32>
    %c0_38 = arith.constant 0 : index
    %c0_39 = arith.constant 0 : index
    %69 = vector.load %arg11[%c0_38, %c0_39] : memref<16x8xf32, #tpu.memory_space<vmem>>, vector<16x8xf32>
    %cst_40 = arith.constant dense<0.000000e+00> : vector<16x512xf32>
    %70 = tpu.matmul %69, %66, %cst_40 {dimension_numbers = #tpu.dot_dimension_numbers<[1], [0], [0], [1], [0, 0, 1, 1], [], []>} : vector<16x8xf32>, vector<8x512xf32>, vector<16x512xf32> -> vector<16x512xf32>
    %71 = tpu.iota {dimensions = array<i32: 0>} : vector<16x1xi32>
    %72 = arith.sitofp %71 : vector<16x1xi32> to vector<16x1xf32>
    %cst_41 = arith.constant 1.500000e+01 : f32
    %73 = vector.broadcast %cst_41 : f32 to vector<16x1xf32>
    %74 = arith.cmpf oeq, %72, %73 : vector<16x1xf32>
    %cst_42 = arith.constant 1.000000e+01 : f32
    %75 = vector.broadcast %cst_42 : f32 to vector<16x512xf32>
    %76 = arith.mulf %75, %68 : vector<16x512xf32>
    %cst_43 = arith.constant -5.000000e+00 : f32
    %77 = vector.broadcast %cst_43 : f32 to vector<16x512xf32>
    %78 = arith.addf %76, %77 : vector<16x512xf32>
    %cst_44 = arith.constant 5.000000e+00 : f32
    %79 = vector.shape_cast %74 : vector<16x1xi1> to vector<16x1xi1>
    %80 = vector.broadcast %79 : vector<16x1xi1> to vector<16x512xi1>
    %81 = vector.broadcast %cst_44 : f32 to vector<16x512xf32>
    %82 = arith.select %80, %81, %78 : vector<16x512xi1>, vector<16x512xf32>
    %cst_45 = arith.constant 1.000000e+01 : f32
    %83 = vector.broadcast %cst_45 : f32 to vector<16x512xf32>
    %84 = arith.mulf %83, %70 : vector<16x512xf32>
    %cst_46 = arith.constant -5.000000e+00 : f32
    %85 = vector.broadcast %cst_46 : f32 to vector<16x512xf32>
    %86 = arith.addf %84, %85 : vector<16x512xf32>
    %cst_47 = arith.constant 5.000000e+00 : f32
    %87 = vector.shape_cast %74 : vector<16x1xi1> to vector<16x1xi1>
    %88 = vector.broadcast %87 : vector<16x1xi1> to vector<16x512xi1>
    %89 = vector.broadcast %cst_47 : f32 to vector<16x512xf32>
    %90 = arith.select %88, %89, %86 : vector<16x512xi1>, vector<16x512xf32>
    %91 = vector.extract_strided_slice %82 {offsets = [0, 0], sizes = [8, 512], strides = [1, 1]} : vector<16x512xf32> to vector<8x512xf32>
    %92 = vector.extract_strided_slice %82 {offsets = [8, 0], sizes = [8, 512], strides = [1, 1]} : vector<16x512xf32> to vector<8x512xf32>
    %93 = vector.extract_strided_slice %90 {offsets = [0, 0], sizes = [8, 512], strides = [1, 1]} : vector<16x512xf32> to vector<8x512xf32>
    %94 = vector.extract_strided_slice %90 {offsets = [8, 0], sizes = [8, 512], strides = [1, 1]} : vector<16x512xf32> to vector<8x512xf32>
    %cst_48 = arith.constant -5.000000e+00 : f32
    %95 = vector.broadcast %cst_48 : f32 to vector<1x512xf32>
    %96 = arith.cmpf oge, %0, %95 : vector<1x512xf32>
    %cst_49 = arith.constant 5.000000e+00 : f32
    %97 = vector.broadcast %cst_49 : f32 to vector<1x512xf32>
    %98 = arith.cmpf ole, %0, %97 : vector<1x512xf32>
    %99 = arith.andi %96, %98 : vector<1x512xi1>
    %cst_50 = arith.constant -5.000000e+00 : f32
    %cst_51 = arith.constant 5.000000e+00 : f32
    %100 = vector.broadcast %cst_50 : f32 to vector<1x512xf32>
    %101 = arith.maximumf %100, %0 : vector<1x512xf32>
    %102 = vector.broadcast %cst_51 : f32 to vector<1x512xf32>
    %103 = arith.minimumf %102, %101 : vector<1x512xf32>
    %104 = tpu.iota {dimensions = array<i32: 0>} : vector<8x1xi32>
    %105 = arith.sitofp %104 : vector<8x1xi32> to vector<8x1xf32>
    %cst_52 = arith.constant 7.000000e+00 : f32
    %106 = vector.broadcast %cst_52 : f32 to vector<8x1xf32>
    %107 = arith.cmpf olt, %105, %106 : vector<8x1xf32>
    %108 = vector.broadcast %103 : vector<1x512xf32> to vector<8x512xf32>
    %109 = arith.cmpf oge, %108, %94 : vector<8x512xf32>
    %110 = vector.broadcast %107 : vector<8x1xi1> to vector<8x512xi1>
    %111 = arith.andi %109, %110 : vector<8x512xi1>
    %112 = arith.extui %111 : vector<8x512xi1> to vector<8x512xi32>
    %113 = arith.sitofp %112 : vector<8x512xi32> to vector<8x512xf32>
    %cst_53 = arith.constant dense<0.000000e+00> : vector<512xf32>
    %114 = vector.multi_reduction <add>, %113, %cst_53 [0] : vector<8x512xf32> to vector<512xf32>
    %115 = vector.shape_cast %114 : vector<512xf32> to vector<1x512xf32>
    %116 = vector.broadcast %105 : vector<8x1xf32> to vector<8x512xf32>
    %117 = vector.broadcast %115 : vector<1x512xf32> to vector<8x512xf32>
    %118 = arith.cmpf oeq, %116, %117 : vector<8x512xf32>
    %119 = arith.extui %118 : vector<8x512xi1> to vector<8x512xi32>
    %120 = arith.sitofp %119 : vector<8x512xi32> to vector<8x512xf32>
    %cst_54 = arith.constant 1.000000e+00 : f32
    %121 = vector.broadcast %cst_54 : f32 to vector<1x512xf32>
    %122 = arith.subf %115, %121 : vector<1x512xf32>
    %123 = vector.broadcast %105 : vector<8x1xf32> to vector<8x512xf32>
    %124 = vector.broadcast %122 : vector<1x512xf32> to vector<8x512xf32>
    %125 = arith.cmpf oeq, %123, %124 : vector<8x512xf32>
    %126 = arith.extui %125 : vector<8x512xi1> to vector<8x512xi32>
    %127 = arith.sitofp %126 : vector<8x512xi32> to vector<8x512xf32>
    %128 = arith.mulf %120, %91 : vector<8x512xf32>
    %cst_55 = arith.constant dense<0.000000e+00> : vector<512xf32>
    %129 = vector.multi_reduction <add>, %128, %cst_55 [0] : vector<8x512xf32> to vector<512xf32>
    %130 = vector.shape_cast %129 : vector<512xf32> to vector<1x512xf32>
    %131 = arith.mulf %120, %92 : vector<8x512xf32>
    %cst_56 = arith.constant dense<0.000000e+00> : vector<512xf32>
    %132 = vector.multi_reduction <add>, %131, %cst_56 [0] : vector<8x512xf32> to vector<512xf32>
    %133 = vector.shape_cast %132 : vector<512xf32> to vector<1x512xf32>
    %134 = arith.mulf %120, %93 : vector<8x512xf32>
    %cst_57 = arith.constant dense<0.000000e+00> : vector<512xf32>
    %135 = vector.multi_reduction <add>, %134, %cst_57 [0] : vector<8x512xf32> to vector<512xf32>
    %136 = vector.shape_cast %135 : vector<512xf32> to vector<1x512xf32>
    %137 = arith.mulf %120, %94 : vector<8x512xf32>
    %cst_58 = arith.constant dense<0.000000e+00> : vector<512xf32>
    %138 = vector.multi_reduction <add>, %137, %cst_58 [0] : vector<8x512xf32> to vector<512xf32>
    %139 = vector.shape_cast %138 : vector<512xf32> to vector<1x512xf32>
    %140 = arith.mulf %127, %30 : vector<8x512xf32>
    %cst_59 = arith.constant dense<0.000000e+00> : vector<512xf32>
    %141 = vector.multi_reduction <add>, %140, %cst_59 [0] : vector<8x512xf32> to vector<512xf32>
    %142 = vector.shape_cast %141 : vector<512xf32> to vector<1x512xf32>
    %143 = arith.mulf %120, %30 : vector<8x512xf32>
    %cst_60 = arith.constant dense<0.000000e+00> : vector<512xf32>
    %144 = vector.multi_reduction <add>, %143, %cst_60 [0] : vector<8x512xf32> to vector<512xf32>
    %145 = vector.shape_cast %144 : vector<512xf32> to vector<1x512xf32>
    %146 = tpu.concatenate %142, %145 in 0 : vector<1x512xf32>, vector<1x512xf32> -> vector<2x512xf32>
    %147 = tpu.iota {dimensions = array<i32: 0>} : vector<2x1xi32>
    %148 = arith.sitofp %147 : vector<2x1xi32> to vector<2x1xf32>
    %cst_61 = arith.constant 7.000000e+00 : f32
    %149 = vector.broadcast %cst_61 : f32 to vector<2x1xf32>
    %150 = arith.mulf %148, %149 : vector<2x1xf32>
    %151 = vector.broadcast %115 : vector<1x512xf32> to vector<2x512xf32>
    %152 = vector.broadcast %150 : vector<2x1xf32> to vector<2x512xf32>
    %153 = arith.cmpf oeq, %151, %152 : vector<2x512xf32>
    %cst_62 = arith.constant 0.000000e+00 : f32
    %154 = vector.broadcast %cst_62 : f32 to vector<2x512xf32>
    %155 = arith.maximumf %146, %154 : vector<2x512xf32>
    %156 = math.absf %146 : vector<2x512xf32>
    %cst_63 = arith.constant 0.000000e+00 : f32
    %157 = vector.broadcast %cst_63 : f32 to vector<2x512xf32>
    %158 = arith.subf %157, %156 : vector<2x512xf32>
    %159 = math.exp %158 : vector<2x512xf32>
    %160 = math.log1p %159 : vector<2x512xf32>
    %161 = arith.addf %155, %160 : vector<2x512xf32>
    %cst_64 = arith.constant 1.000000e-03 : f32
    %162 = vector.broadcast %cst_64 : f32 to vector<2x512xf32>
    %163 = arith.addf %162, %161 : vector<2x512xf32>
    %cst_65 = arith.constant 1.000000e+00 : f32
    %164 = vector.broadcast %cst_65 : f32 to vector<2x512xf32>
    %165 = arith.select %153, %164, %163 : vector<2x512xi1>, vector<2x512xf32>
    %166 = vector.extract_strided_slice %165 {offsets = [0, 0], sizes = [1, 512], strides = [1, 1]} : vector<2x512xf32> to vector<1x512xf32>
    %167 = vector.extract_strided_slice %165 {offsets = [1, 0], sizes = [1, 512], strides = [1, 1]} : vector<2x512xf32> to vector<1x512xf32>
    %168 = arith.subf %133, %130 : vector<1x512xf32>
    %169 = arith.subf %139, %136 : vector<1x512xf32>
    %170 = tpu.reciprocal %168 {approx = true} : vector<1x512xf32> -> vector<1x512xf32>
    %171 = arith.mulf %168, %170 : vector<1x512xf32>
    %cst_66 = arith.constant 2.000000e+00 : f32
    %172 = vector.broadcast %cst_66 : f32 to vector<1x512xf32>
    %173 = arith.subf %172, %171 : vector<1x512xf32>
    %174 = arith.mulf %170, %173 : vector<1x512xf32>
    %175 = arith.mulf %169, %174 : vector<1x512xf32>
    %176 = arith.subf %103, %136 : vector<1x512xf32>
    %177 = arith.addf %166, %167 : vector<1x512xf32>
    %cst_67 = arith.constant 2.000000e+00 : f32
    %178 = vector.broadcast %cst_67 : f32 to vector<1x512xf32>
    %179 = arith.mulf %178, %175 : vector<1x512xf32>
    %180 = arith.subf %177, %179 : vector<1x512xf32>
    %181 = arith.mulf %176, %180 : vector<1x512xf32>
    %182 = arith.mulf %169, %166 : vector<1x512xf32>
    %183 = arith.mulf %169, %175 : vector<1x512xf32>
    %184 = arith.addf %181, %183 : vector<1x512xf32>
    %185 = arith.subf %184, %182 : vector<1x512xf32>
    %186 = arith.subf %182, %181 : vector<1x512xf32>
    %cst_68 = arith.constant 0.000000e+00 : f32
    %187 = vector.broadcast %cst_68 : f32 to vector<1x512xf32>
    %188 = arith.subf %187, %175 : vector<1x512xf32>
    %189 = arith.mulf %188, %176 : vector<1x512xf32>
    %190 = arith.mulf %186, %186 : vector<1x512xf32>
    %cst_69 = arith.constant 4.000000e+00 : f32
    %191 = vector.broadcast %cst_69 : f32 to vector<1x512xf32>
    %192 = arith.mulf %191, %185 : vector<1x512xf32>
    %193 = arith.mulf %192, %189 : vector<1x512xf32>
    %194 = arith.subf %190, %193 : vector<1x512xf32>
    %cst_70 = arith.constant 0.000000e+00 : f32
    %195 = vector.broadcast %cst_70 : f32 to vector<1x512xf32>
    %196 = arith.maximumf %194, %195 : vector<1x512xf32>
    %cst_71 = arith.constant 2.000000e+00 : f32
    %197 = vector.broadcast %cst_71 : f32 to vector<1x512xf32>
    %198 = arith.mulf %197, %189 : vector<1x512xf32>
    %cst_72 = arith.constant 0.000000e+00 : f32
    %199 = vector.broadcast %cst_72 : f32 to vector<1x512xf32>
    %200 = arith.subf %199, %186 : vector<1x512xf32>
    %201 = math.sqrt %196 : vector<1x512xf32>
    %202 = arith.subf %200, %201 : vector<1x512xf32>
    %203 = arith.divf %198, %202 : vector<1x512xf32>
    %204 = arith.mulf %203, %168 : vector<1x512xf32>
    %205 = arith.addf %204, %130 : vector<1x512xf32>
    %cst_73 = arith.constant 1.000000e+00 : f32
    %206 = vector.broadcast %cst_73 : f32 to vector<1x512xf32>
    %207 = arith.subf %206, %203 : vector<1x512xf32>
    %208 = arith.mulf %203, %207 : vector<1x512xf32>
    %209 = arith.mulf %180, %208 : vector<1x512xf32>
    %210 = arith.addf %175, %209 : vector<1x512xf32>
    %211 = arith.mulf %175, %175 : vector<1x512xf32>
    %212 = arith.mulf %167, %203 : vector<1x512xf32>
    %213 = arith.mulf %212, %203 : vector<1x512xf32>
    %cst_74 = arith.constant 2.000000e+00 : f32
    %214 = vector.broadcast %cst_74 : f32 to vector<1x512xf32>
    %215 = arith.mulf %214, %175 : vector<1x512xf32>
    %216 = arith.mulf %215, %208 : vector<1x512xf32>
    %217 = arith.addf %213, %216 : vector<1x512xf32>
    %218 = arith.mulf %166, %207 : vector<1x512xf32>
    %219 = arith.mulf %218, %207 : vector<1x512xf32>
    %220 = arith.addf %217, %219 : vector<1x512xf32>
    %221 = arith.mulf %211, %220 : vector<1x512xf32>
    %222 = arith.mulf %210, %210 : vector<1x512xf32>
    %223 = tpu.reciprocal %221 {approx = true} : vector<1x512xf32> -> vector<1x512xf32>
    %224 = arith.mulf %221, %223 : vector<1x512xf32>
    %cst_75 = arith.constant 2.000000e+00 : f32
    %225 = vector.broadcast %cst_75 : f32 to vector<1x512xf32>
    %226 = arith.subf %225, %224 : vector<1x512xf32>
    %227 = arith.mulf %223, %226 : vector<1x512xf32>
    %228 = arith.mulf %222, %227 : vector<1x512xf32>
    %229 = math.log %228 : vector<1x512xf32>
    %230 = arith.select %99, %205, %0 : vector<1x512xi1>, vector<1x512xf32>
    %c0_76 = arith.constant 0 : index
    %c0_77 = arith.constant 0 : index
    %231 = vector.load %arg12[%c0_76, %c0_77] : memref<1x512xf32, #tpu.memory_space<vmem>>, vector<1x512xf32>
    tpu.vector_store %arg12[%c0_76, %c0_77], %230 {strides = array<i32>} : memref<1x512xf32, #tpu.memory_space<vmem>>, vector<1x512xf32>,
    %cst_78 = arith.constant 0.000000e+00 : f32
    %232 = vector.broadcast %cst_78 : f32 to vector<1x512xf32>
    %233 = arith.select %99, %229, %232 : vector<1x512xi1>, vector<1x512xf32>
    %c0_79 = arith.constant 0 : index
    %c0_80 = arith.constant 0 : index
    %234 = vector.load %arg13[%c0_79, %c0_80] : memref<1x512xf32, #tpu.memory_space<vmem>>, vector<1x512xf32>
    tpu.vector_store %arg13[%c0_79, %c0_80], %233 {strides = array<i32>} : memref<1x512xf32, #tpu.memory_space<vmem>>, vector<1x512xf32>,
    return
  }
  func.func @transform_0(%arg0: i32) -> (i32, i32) {
    %c0_i32 = arith.constant 0 : i32
    %c0_i32_0 = arith.constant 0 : i32
    return %c0_i32, %arg0 : i32, i32
  }
  func.func @transform_1(%arg0: i32) -> (i32, i32) {
    %c0_i32 = arith.constant 0 : i32
    %c0_i32_0 = arith.constant 0 : i32
    return %c0_i32, %arg0 : i32, i32
  }
  func.func @transform_2(%arg0: i32) -> (i32, i32) {
    %c0_i32 = arith.constant 0 : i32
    %c0_i32_0 = arith.constant 0 : i32
    %c0_i32_1 = arith.constant 0 : i32
    return %c0_i32, %c0_i32_0 : i32, i32
  }
  func.func @transform_3(%arg0: i32) -> (i32, i32) {
    %c0_i32 = arith.constant 0 : i32
    %c0_i32_0 = arith.constant 0 : i32
    %c0_i32_1 = arith.constant 0 : i32
    return %c0_i32, %c0_i32_0 : i32, i32
  }
  func.func @transform_4(%arg0: i32) -> (i32, i32) {
    %c0_i32 = arith.constant 0 : i32
    %c0_i32_0 = arith.constant 0 : i32
    %c0_i32_1 = arith.constant 0 : i32
    return %c0_i32, %c0_i32_0 : i32, i32
  }
  func.func @transform_5(%arg0: i32) -> (i32, i32) {
    %c0_i32 = arith.constant 0 : i32
    %c0_i32_0 = arith.constant 0 : i32
    %c0_i32_1 = arith.constant 0 : i32
    return %c0_i32, %c0_i32_0 : i32, i32
  }
  func.func @transform_6(%arg0: i32) -> (i32, i32) {
    %c0_i32 = arith.constant 0 : i32
    %c0_i32_0 = arith.constant 0 : i32
    %c0_i32_1 = arith.constant 0 : i32
    return %c0_i32, %c0_i32_0 : i32, i32
  }
  func.func @transform_7(%arg0: i32) -> (i32, i32) {
    %c0_i32 = arith.constant 0 : i32
    %c0_i32_0 = arith.constant 0 : i32
    %c0_i32_1 = arith.constant 0 : i32
    return %c0_i32, %c0_i32_0 : i32, i32
  }
  func.func @transform_8(%arg0: i32) -> (i32, i32) {
    %c0_i32 = arith.constant 0 : i32
    %c0_i32_0 = arith.constant 0 : i32
    %c0_i32_1 = arith.constant 0 : i32
    return %c0_i32, %c0_i32_0 : i32, i32
  }
  func.func @transform_9(%arg0: i32) -> (i32, i32) {
    %c0_i32 = arith.constant 0 : i32
    %c0_i32_0 = arith.constant 0 : i32
    %c0_i32_1 = arith.constant 0 : i32
    return %c0_i32, %c0_i32_0 : i32, i32
  }
  func.func @transform_10(%arg0: i32) -> (i32, i32) {
    %c0_i32 = arith.constant 0 : i32
    %c0_i32_0 = arith.constant 0 : i32
    %c0_i32_1 = arith.constant 0 : i32
    return %c0_i32, %c0_i32_0 : i32, i32
  }
  func.func @transform_11(%arg0: i32) -> (i32, i32) {
    %c0_i32 = arith.constant 0 : i32
    %c0_i32_0 = arith.constant 0 : i32
    return %c0_i32, %arg0 : i32, i32
  }
  func.func @transform_12(%arg0: i32) -> (i32, i32) {
    %c0_i32 = arith.constant 0 : i32
    %c0_i32_0 = arith.constant 0 : i32
    return %c0_i32, %arg0 : i32, i32
  }
}

</mosaic_0001>

<bundles_post_ra>
// kernel: rqs_forward.1
= control target key start
LH: loop header
LB: loop body
LE: loop exit
PB: predicated region body
PF: predicated region fallthrough
CT: control target
= control target key end

     0   :  { %18 = vsyncpa [#allocation3], 0  ;;  %s4098_s0 = inlined_call_operand.vmem [shape: f32[1,1024], index: 0, kind: input, shape index: {}]   ;;  %s4099_s1 = inlined_call_operand.vmem [shape: f32[8,1024], index: 1, kind: input, shape index: {}]   ;;  %s4100_s2 = inlined_call_operand.vmem [shape: f32[32,8], index: 2, kind: input, shape index: {}]   ;;  %s4101_s3 = inlined_call_operand.vmem [shape: f32[32,1], index: 3, kind: input, shape index: {}]   ;;  %s4102_s4 = inlined_call_operand.vmem [shape: f32[32,32], index: 4, kind: input, shape index: {}]   ;;  %s4103_s5 = inlined_call_operand.vmem [shape: f32[32,1], index: 5, kind: input, shape index: {}]   ;;  %s4104_s6 = inlined_call_operand.vmem [shape: f32[32,32], index: 6, kind: input, shape index: {}]   ;;  %s4105_s7 = inlined_call_operand.vmem [shape: f32[32,1], index: 7, kind: input, shape index: {}]   ;;  %s4106_s8 = inlined_call_operand.vmem [shape: f32[24,32], index: 8, kind: input, shape index: {}]   ;;  %s4107_s9 = inlined_call_operand.vmem [shape: f32[24,1], index: 9, kind: input, shape index: {}]   ;;  %s4108_s10 = inlined_call_operand.vmem [shape: f32[16,8], index: 10, kind: input, shape index: {}]   ;;  %s4109_s11 = inlined_call_operand.vmem [shape: f32[1,1024], index: 11, kind: output, shape index: {0}]   ;;  %s4110_s12 = inlined_call_operand.hbm [shape: f32[1,1024], index: 12, kind: output, shape index: {1}]  }
   0x1   :  { %20 = vsyncpa [#allocation3 + $0x1], 0  ;;  %s3242_s21 = smov 0   ;;  %s3244_s22 = smov 0  }
   0x2   :  { %s3246_s23 = smov 0   ;;  %s3248_s24 = smov 0  }
   0x3 LB: > { %4113 = sst [smem:[#allocation5_spill]] %s3167_s23  ;;  %s3263_s25 = sadd.s32 4294967295, %s3171_s24   ;;  %s3171_s24 = sphi %s3248_s24, %s4130_s24   ;;  %s3167_s23 = sphi %s3246_s23, %s4127_s23   ;;  %s3163_s22 = sphi %s3244_s22, %s4129_s22   ;;  %s3159_s21 = sphi %s3242_s21, %s4128_s21  }
   0x4   : > { %s2908_s26 = sadd.s32 4294967294, %s3171_s24   ;;  %s3267_s27 = sadd.s32 1, %s3171_s24  }
   0x5   : > { %s300_s28 = sadd.s32 1, %s3167_s23  ;;  %s297_s29 = ssub.s32 %s3171_s24, %s3267_s27 }
   0x6   : > { %p310_p0 = scmp.ne.s32.totalorder %s3167_s23, %s3163_s22  ;;  %p298_p1 = scmp.eq.s32.totalorder %s297_s29, 0 }
   0x7   : > { %p311_p2 = scmp.eq.s32.totalorder %s3263_s25, 1  ;;  %p316_p3 = scmp.ne.s32.totalorder %s3163_s22, %s3159_s21 }
   0x8   : > { %p317_p4 = scmp.eq.s32.totalorder %s2908_s26, 1  ;;  %p2911_p7 = scmp.ge.s32.totalorder %s3171_s24, 1 }
   0x9   : > { %s3278_s30 = scalar_select %p298_p1, %s3167_s23, %s300_s28  }
   0xa   : > { %p3280_p5 = por %p311_p2, %p310_p0  ;;  %p3284_p6 = por %p317_p4, %p316_p3 }
   0xb   : > { %4114 = sst [smem:[#allocation6_spill]] %s3278_s30  ;;  %p379_p8 = scmp.lt.s32.totalorder %s3171_s24, 3 }
   0xd   : > { %p380_p9 = pnand %p2911_p7, %p379_p8 }
   0xe   : > { %s2913_s15 = sshll.u32 (!%p380_p9), %s3263_s25, 2  ;;  %s2977_s26 = sshll.u32 (!%p380_p9), %s3263_s25, 6 }
   0xf   : > { %383 = sbr.rel (%p380_p9) target bundleno = 1436 (0x59c), region = 64  ;;  %p430_p10 = scmp.lt.s32.totalorder (!%p380_p9), %s2913_s15, 7 }
  0x10   : > { %s3176_s25 = smov (!%p380_p9), [#allocation2]  }
  0x14   : > { %v3173_v0 = vmov 0.0   ;;  %v458_v1 = vld [vmem:[%s4101_s3 + $0x18] sm:$0xff]  ;;  %v3174_v2 = vmov 0   ;;  %v456_v3 = vld [vmem:[%s4101_s3 + $0x8] sm:$0xff]  ;;  %s4132_s15 = smov (!%p430_p10, %s2913_s15), 7  ;;  %v457_v4 = vld [vmem:[%s4101_s3 + $0x10] sm:$0xff] }
  0x15   : > { %556 = vmatprep.mubr.f32.mxu0 %v3173_v0  ;;  %645 = vmatprep.mubr.f32.mxu1 %v3173_v0  ;;  %v455_v5 = vld [vmem:[%s4101_s3] sm:$0xff]  ;;  %s2915_s16 = sshll.u32 %s4132_s15, 3  ;;  %vm479_vm0 = vcmask 64512   ;;  %v693_v11 = vld [vmem:[%s4103_s5 + $0x18] sm:$0xff]  ;;  %v692_v12 = vld [vmem:[%s4103_s5 + $0x10] sm:$0xff]  ;;  %vm714_vm1 = vcmask 261120   ;;  %s443_s19 = scalar_lea.vmem %s4109_s11, %s4132_s15 }
  0x16   : > { %3020 = vset.pattern.permute.xlu0 %v3174_v2  ;;  %3021 = vset.pattern.permute.xlu1 %v3174_v2  ;;  %s438_s23 = scalar_lea.vmem %s4099_s1, %s2915_s16  ;;  %v451_v6 = vld [vmem:[%s4100_s2] sm:$0xff]  ;;  %v452_v13 = vld [vmem:[%s4100_s2 + $0x8] sm:$0xff]  ;;  %v453_v16 = vld [vmem:[%s4100_s2 + $0x10] sm:$0xff]  ;;  %s3527_s16 = scalar_lea.vmem %s4098_s0, %s4132_s15 }
  0x17   : > { %476 = vperm.xlu0 %3020, %v458_v1   ;;  %466 = vperm.xlu1 %3021, %v456_v3   ;;  %v448_v7 = vld [vmem:[%s438_s23 + $0x8] sm:$0xff]  ;;  %v450_v8 = vld [vmem:[%s438_s23 + $0x18] sm:$0xff]  ;;  %v447_v9 = vld [vmem:[%s438_s23] sm:$0xff]  ;;  %s426_s15 = sand.u32 1, %s3163_s22  }
  0x18   : > { %522 = vmatprep.subr.mxu0 %v448_v7  ;;  %611 = vmatprep.subr.mxu1 %v450_v8  ;;  %v449_v10 = vld [vmem:[%s438_s23 + $0x10] sm:$0xff]  ;;  %v691_v14 = vld [vmem:[%s4103_s5 + $0x8] sm:$0xff]  ;;  %v690_v15 = vld [vmem:[%s4103_s5] sm:$0xff]  ;;  %s2912_s20 = sshll.u32 %s426_s15, 2  ;;  %s2802_s17 = scalar_lea.sflag [#allocation3], %s426_s15 }
  0x19   : > { %523 = vmatpush1.msra.mxu0 %v447_v9  ;;  %612 = vmatpush1.msra.mxu1 %v449_v10  ;;  %v928_v17 = vld [vmem:[%s4105_s7 + $0x18] sm:$0xff]  ;;  %v927_v18 = vld [vmem:[%s4105_s7 + $0x10] sm:$0xff]  ;;  %v926_v20 = vld [vmem:[%s4105_s7 + $0x8] sm:$0xff]  ;;  %s428_s30 = scalar_lea.vmem [#allocation2], %s2912_s20 }
  0x1a   : > { %2917 = vmatmul.mubr.msk.f32.vlgmr.msra.gmra.mxu0 %vm479_vm0, %v451_v6  ;;  %2921 = vmatmul.mubr.msk.f32.vlgmr.msra.gmra.mxu1 %vm479_vm0, %v451_v6  ;;  %v454_v19 = vld [vmem:[%s4100_s2 + $0x18] sm:$0xff]  ;;  %v925_v21 = vld [vmem:[%s4105_s7] sm:$0xff]  ;;  %v1159_v23 = vld [vmem:[%s4107_s9 + $0x8] sm:$0xff]  ;;  %s2820_s28 = sshll.u32 %s428_s30, 4  ;;  %s2821_s28 = int_to_ptr.vmem [resolvable:$true] %s2820_s28 }
  0x1b   : > { %471 = vperm.xlu0 %3020, %v457_v4   ;;  %461 = vperm.xlu1 %3021, %v455_v5   ;;  %v1158_v22 = vld [vmem:[%s4107_s9] sm:$0xff]  ;;  %v1160_v24 = vld [vmem:[%s4107_s9 + $0x10] sm:$0xff]  ;;  %s3111_s18 = scalar_lea.vmem %s2821_s28, 64 }
  0x1c   : > { %562 = vmatprep.mubr.f32.mxu0 %v3173_v0  ;;  %651 = vmatprep.mubr.f32.mxu1 %v3173_v0  ;;  %p3112_p11 = scmp.ne.s32.totalorder %s2821_s28, %s3111_s18 }
  0x1e   : > { %2918 = vmatmul.mubr.msk.f32.gmra.mxu0 %vm479_vm0, %v452_v13  ;;  %2922 = vmatmul.mubr.msk.f32.gmra.mxu1 %vm479_vm0, %v452_v13  ;;  %p3113_p12 = pnand %p3112_p11, %p3280_p5 }
  0x1f   : > { %711 = vperm.xlu0 %3020, %v693_v11   ;;  %706 = vperm.xlu1 %3021, %v692_v12  }
  0x20   : > { %568 = vmatprep.mubr.f32.mxu0 %v3173_v0  ;;  %657 = vmatprep.mubr.f32.mxu1 %v3173_v0  ;;  %p3114_p13 = pneg %p3113_p12 }
  0x22   : > { %2919 = vmatmul.mubr.msk.f32.gmra.mxu0 %vm479_vm0, %v453_v16  ;;  %2923 = vmatmul.mubr.msk.f32.gmra.mxu1 %vm479_vm0, %v453_v16  ;;  %v688_v16 = vld [vmem:[%s4102_s4 + $0x10] sm:$0xff] }
  0x23   : > { %701 = vperm.xlu0 %3020, %v691_v14   ;;  %696 = vperm.xlu1 %3021, %v690_v15   ;;  %v686_v14 = vld [vmem:[%s4102_s4] sm:$0xff]  ;;  %v687_v15 = vld [vmem:[%s4102_s4 + $0x8] sm:$0xff] }
  0x24   : > { %574 = vmatprep.mubr.f32.mxu0 %v3173_v0  ;;  %663 = vmatprep.mubr.f32.mxu1 %v3173_v0 }
  0x26   : > { %2920 = vmatmul.mubr.msk.f32.gmra.mxu0 %vm479_vm0, %v454_v19  ;;  %2924 = vmatmul.mubr.msk.f32.gmra.mxu1 %vm479_vm0, %v454_v19 }
  0x27   : > { %946 = vperm.xlu0 %3020, %v928_v17   ;;  %941 = vperm.xlu1 %3021, %v927_v18   ;;  %v689_v17 = vld [vmem:[%s4102_s4 + $0x18] sm:$0xff] }
  0x28   : > { %791 = vmatprep.mubr.f32.mxu0 %v3173_v0  ;;  %880 = vmatprep.mubr.f32.mxu1 %v3173_v0 }
  0x2b   : > { %936 = vperm.xlu0 %3020, %v926_v20   ;;  %931 = vperm.xlu1 %3021, %v925_v21  }
  0x2f   : > { %1163 = vperm.xlu0 %3020, %v1158_v22   ;;  %1168 = vperm.xlu1 %3021, %v1159_v23  }
  0x33   : > { %1173 = vperm.xlu0 %3020, %v1160_v24  }
  0x92   : > { %v477_v33 = vpop.permute.xlu0 %476  ;;  %v467_v38 = vpop.permute.xlu1 %466 }
  0x96   : > { %v472_v41 = vpop.permute.xlu0 %471  ;;  %v462_v56 = vpop.permute.xlu1 %461 }
  0xda   : > { %v558_v25 = vpop.f32.mrf.mxu0  ;;  %v647_v26 = vpop.f32.mrf.mxu1 }
  0xdb   : > { %v559_v2 = vadd.f32 %v558_v25, %v462_v56  ;;  %v648_v3 = vadd.f32 %v647_v26, %v462_v56 }
  0xdc   : > { %v560_v27 = vpop.f32.mrf.mxu0  ;;  %v649_v28 = vpop.f32.mrf.mxu1 }
  0xdd   : > { %v561_v61 = vadd.f32 %v560_v27, %v462_v56  ;;  %v650_v62 = vadd.f32 %v649_v28, %v462_v56  ;;  %v670_v12 = vmax.f32 %v559_v2, 0.0  ;;  %v672_v13 = vmax.f32 %v648_v3, 0.0  ;;  %v712_v28 = vpop.permute.xlu0 %711 }
  0xde   : > { %v564_v29 = vpop.f32.mrf.mxu0  ;;  %v653_v30 = vpop.f32.mrf.mxu1 }
  0xdf   : > { %v565_v57 = vadd.f32 %v564_v29, %v467_v38  ;;  %v654_v58 = vadd.f32 %v653_v30, %v467_v38  ;;  %v671_v10 = vmax.f32 %v561_v61, 0.0  ;;  %v673_v11 = vmax.f32 %v650_v62, 0.0 }
  0xe0   : > { %v566_v31 = vpop.f32.mrf.mxu0  ;;  %v655_v32 = vpop.f32.mrf.mxu1 }
  0xe1   : > { %v567_v52 = vadd.f32 %v566_v31, %v467_v38  ;;  %v656_v53 = vadd.f32 %v655_v32, %v467_v38  ;;  %v674_v8 = vmax.f32 %v565_v57, 0.0  ;;  %v676_v9 = vmax.f32 %v654_v58, 0.0  ;;  %v707_v31 = vpop.permute.xlu1 %706 }
  0xe2   : > { %v570_v34 = vpop.f32.mrf.mxu0  ;;  %v659_v35 = vpop.f32.mrf.mxu1 }
  0xe3   : > { %v571_v50 = vadd.f32 %v570_v34, %v472_v41  ;;  %v660_v51 = vadd.f32 %v659_v35, %v472_v41  ;;  %v675_v6 = vmax.f32 %v567_v52, 0.0  ;;  %v677_v7 = vmax.f32 %v656_v53, 0.0 }
  0xe4   : > { %v572_v36 = vpop.f32.mrf.mxu0  ;;  %v661_v37 = vpop.f32.mrf.mxu1 }
  0xe5   : > { %v573_v46 = vadd.f32 %v572_v36, %v472_v41  ;;  %v662_v47 = vadd.f32 %v661_v37, %v472_v41  ;;  %v678_v4 = vmax.f32 %v571_v50, 0.0  ;;  %v680_v5 = vmax.f32 %v660_v51, 0.0 }
  0xe6   : > { %v576_v39 = vpop.f32.mrf.mxu0  ;;  %v665_v40 = vpop.f32.mrf.mxu1 }
  0xe7   : > { %v577_v42 = vadd.f32 %v576_v39, %v477_v33  ;;  %v666_v43 = vadd.f32 %v665_v40, %v477_v33  ;;  %v679_v63 = vmax.f32 %v573_v46, 0.0  ;;  %v681_v1 = vmax.f32 %v662_v47, 0.0 }
  0xe8   : > { %v578_v44 = vpop.f32.mrf.mxu0  ;;  %v667_v45 = vpop.f32.mrf.mxu1 }
  0xe9   : > { %v579_v48 = vadd.f32 %v578_v44, %v477_v33  ;;  %v668_v49 = vadd.f32 %v667_v45, %v477_v33  ;;  %v682_v59 = vmax.f32 %v577_v42, 0.0  ;;  %v684_v60 = vmax.f32 %v666_v43, 0.0  ;;  %v702_v42 = vpop.permute.xlu0 %701 }
  0xeb   : > { %v683_v54 = vmax.f32 %v579_v48, 0.0  ;;  %v685_v55 = vmax.f32 %v668_v49, 0.0  ;;  %v697_v49 = vpop.permute.xlu1 %696 }
  0xed   : > { %751 = vmatprep.subr.mxu0 %v683_v54  ;;  %840 = vmatprep.subr.mxu1 %v685_v55 }
  0xee   : > { %752 = vmatpush1.msra.mxu0 %v682_v59  ;;  %841 = vmatpush1.msra.mxu1 %v684_v60 }
  0xef   : > { %753 = vmatprep.subr.mxu0 %v679_v63  ;;  %842 = vmatprep.subr.mxu1 %v681_v1 }
  0xf0   : > { %754 = vmatpush1.msra.mxu0 %v678_v4  ;;  %843 = vmatpush1.msra.mxu1 %v680_v5 }
  0xf1   : > { %755 = vmatprep.subr.mxu0 %v675_v6  ;;  %844 = vmatprep.subr.mxu1 %v677_v7  ;;  %v921_v7 = vld [vmem:[%s4104_s6] sm:$0xff] }
  0xf2   : > { %756 = vmatpush1.msra.mxu0 %v674_v8  ;;  %845 = vmatpush1.msra.mxu1 %v676_v9  ;;  %v922_v8 = vld [vmem:[%s4104_s6 + $0x8] sm:$0xff]  ;;  %v923_v9 = vld [vmem:[%s4104_s6 + $0x10] sm:$0xff] }
  0xf3   : > { %757 = vmatprep.subr.mxu0 %v671_v10  ;;  %846 = vmatprep.subr.mxu1 %v673_v11  ;;  %v924_v10 = vld [vmem:[%s4104_s6 + $0x18] sm:$0xff] }
  0xf4   : > { %758 = vmatpush1.msra.mxu0 %v670_v12  ;;  %847 = vmatpush1.msra.mxu1 %v672_v13 }
  0xf5   : > { %2925 = vmatmul.mubr.msk.f32.vlgmr.msra.gmra.mxu0 %vm714_vm1, %v686_v14  ;;  %2929 = vmatmul.mubr.msk.f32.vlgmr.msra.gmra.mxu1 %vm714_vm1, %v686_v14 }
  0xf6   : > { %797 = vmatprep.mubr.f32.mxu0 %v3173_v0  ;;  %886 = vmatprep.mubr.f32.mxu1 %v3173_v0 }
  0xf9   : > { %2926 = vmatmul.mubr.msk.f32.gmra.mxu0 %vm714_vm1, %v687_v15  ;;  %2930 = vmatmul.mubr.msk.f32.gmra.mxu1 %vm714_vm1, %v687_v15 }
  0xfa   : > { %803 = vmatprep.mubr.f32.mxu0 %v3173_v0  ;;  %892 = vmatprep.mubr.f32.mxu1 %v3173_v0 }
  0xfd   : > { %2927 = vmatmul.mubr.msk.f32.gmra.mxu0 %vm714_vm1, %v688_v16  ;;  %2931 = vmatmul.mubr.msk.f32.gmra.mxu1 %vm714_vm1, %v688_v16 }
  0xfe   : > { %809 = vmatprep.mubr.f32.mxu0 %v3173_v0  ;;  %898 = vmatprep.mubr.f32.mxu1 %v3173_v0 }
 0x101   : > { %2928 = vmatmul.mubr.msk.f32.gmra.mxu0 %vm714_vm1, %v689_v17  ;;  %2932 = vmatmul.mubr.msk.f32.gmra.mxu1 %vm714_vm1, %v689_v17 }
 0x102   : > { %1025 = vmatprep.mubr.f32.mxu0 %v3173_v0  ;;  %1114 = vmatprep.mubr.f32.mxu1 %v3173_v0 }
 0x1b5   : > { %v793_v18 = vpop.f32.mrf.mxu0  ;;  %v882_v19 = vpop.f32.mrf.mxu1 }
 0x1b6   : > { %v794_v58 = vadd.f32 %v793_v18, %v697_v49  ;;  %v883_v59 = vadd.f32 %v882_v19, %v697_v49 }
 0x1b7   : > { %v795_v20 = vpop.f32.mrf.mxu0  ;;  %v884_v21 = vpop.f32.mrf.mxu1 }
 0x1b8   : > { %v796_v54 = vadd.f32 %v795_v20, %v697_v49  ;;  %v885_v55 = vadd.f32 %v884_v21, %v697_v49  ;;  %v905_v5 = vmax.f32 %v794_v58, 0.0  ;;  %v907_v6 = vmax.f32 %v883_v59, 0.0  ;;  %v947_v21 = vpop.permute.xlu0 %946 }
 0x1b9   : > { %v799_v22 = vpop.f32.mrf.mxu0  ;;  %v888_v23 = vpop.f32.mrf.mxu1 }
 0x1ba   : > { %v800_v50 = vadd.f32 %v799_v22, %v702_v42  ;;  %v889_v51 = vadd.f32 %v888_v23, %v702_v42  ;;  %v906_v3 = vmax.f32 %v796_v54, 0.0  ;;  %v908_v4 = vmax.f32 %v885_v55, 0.0 }
 0x1bb   : > { %v801_v24 = vpop.f32.mrf.mxu0  ;;  %v890_v25 = vpop.f32.mrf.mxu1 }
 0x1bc   : > { %v802_v45 = vadd.f32 %v801_v24, %v702_v42  ;;  %v891_v46 = vadd.f32 %v890_v25, %v702_v42  ;;  %v909_v1 = vmax.f32 %v800_v50, 0.0  ;;  %v911_v2 = vmax.f32 %v889_v51, 0.0  ;;  %v942_v24 = vpop.permute.xlu1 %941 }
 0x1bd   : > { %v805_v26 = vpop.f32.mrf.mxu0  ;;  %v894_v27 = vpop.f32.mrf.mxu1 }
 0x1be   : > { %v806_v43 = vadd.f32 %v805_v26, %v707_v31  ;;  %v895_v44 = vadd.f32 %v894_v27, %v707_v31  ;;  %v910_v62 = vmax.f32 %v802_v45, 0.0  ;;  %v912_v63 = vmax.f32 %v891_v46, 0.0 }
 0x1bf   : > { %v807_v29 = vpop.f32.mrf.mxu0  ;;  %v896_v30 = vpop.f32.mrf.mxu1 }
 0x1c0   : > { %v808_v38 = vadd.f32 %v807_v29, %v707_v31  ;;  %v897_v39 = vadd.f32 %v896_v30, %v707_v31  ;;  %v913_v60 = vmax.f32 %v806_v43, 0.0  ;;  %v915_v61 = vmax.f32 %v895_v44, 0.0  ;;  %v932_v42 = vpop.permute.xlu1 %931 }
 0x1c1   : > { %v811_v32 = vpop.f32.mrf.mxu0  ;;  %v900_v33 = vpop.f32.mrf.mxu1 }
 0x1c2   : > { %v812_v34 = vadd.f32 %v811_v32, %v712_v28  ;;  %v901_v35 = vadd.f32 %v900_v33, %v712_v28  ;;  %v914_v56 = vmax.f32 %v808_v38, 0.0  ;;  %v916_v57 = vmax.f32 %v897_v39, 0.0 }
 0x1c3   : > { %v813_v36 = vpop.f32.mrf.mxu0  ;;  %v902_v37 = vpop.f32.mrf.mxu1 }
 0x1c4   : > { %v814_v40 = vadd.f32 %v813_v36, %v712_v28  ;;  %v903_v41 = vadd.f32 %v902_v37, %v712_v28  ;;  %v917_v52 = vmax.f32 %v812_v34, 0.0  ;;  %v919_v53 = vmax.f32 %v901_v35, 0.0  ;;  %v937_v35 = vpop.permute.xlu0 %936 }
 0x1c6   : > { %v918_v47 = vmax.f32 %v814_v40, 0.0  ;;  %v920_v48 = vmax.f32 %v903_v41, 0.0 }
 0x1c8   : > { %985 = vmatprep.subr.mxu0 %v918_v47  ;;  %1074 = vmatprep.subr.mxu1 %v920_v48 }
 0x1c9   : > { %986 = vmatpush1.msra.mxu0 %v917_v52  ;;  %1075 = vmatpush1.msra.mxu1 %v919_v53 }
 0x1ca   : > { %987 = vmatprep.subr.mxu0 %v914_v56  ;;  %1076 = vmatprep.subr.mxu1 %v916_v57 }
 0x1cb   : > { %988 = vmatpush1.msra.mxu0 %v913_v60  ;;  %1077 = vmatpush1.msra.mxu1 %v915_v61 }
 0x1cc   : > { %989 = vmatprep.subr.mxu0 %v910_v62  ;;  %1078 = vmatprep.subr.mxu1 %v912_v63  ;;  %v1155_v63 = vld [vmem:[%s4106_s8] sm:$0xff] }
 0x1cd   : > { %990 = vmatpush1.msra.mxu0 %v909_v1  ;;  %1079 = vmatpush1.msra.mxu1 %v911_v2  ;;  %v1156_v1 = vld [vmem:[%s4106_s8 + $0x8] sm:$0xff]  ;;  %v1157_v2 = vld [vmem:[%s4106_s8 + $0x10] sm:$0xff] }
 0x1ce   : > { %991 = vmatprep.subr.mxu0 %v906_v3  ;;  %1080 = vmatprep.subr.mxu1 %v908_v4  ;;  %v1164_v3 = vpop.permute.xlu0 %1163 }
 0x1cf   : > { %992 = vmatpush1.msra.mxu0 %v905_v5  ;;  %1081 = vmatpush1.msra.mxu1 %v907_v6 }
 0x1d0   : > { %2933 = vmatmul.mubr.msk.f32.vlgmr.msra.gmra.mxu0 %vm714_vm1, %v921_v7  ;;  %2937 = vmatmul.mubr.msk.f32.vlgmr.msra.gmra.mxu1 %vm714_vm1, %v921_v7 }
 0x1d1   : > { %1031 = vmatprep.mubr.f32.mxu0 %v3173_v0  ;;  %1120 = vmatprep.mubr.f32.mxu1 %v3173_v0 }
 0x1d4   : > { %2934 = vmatmul.mubr.msk.f32.gmra.mxu0 %vm714_vm1, %v922_v8  ;;  %2938 = vmatmul.mubr.msk.f32.gmra.mxu1 %vm714_vm1, %v922_v8 }
 0x1d5   : > { %1037 = vmatprep.mubr.f32.mxu0 %v3173_v0  ;;  %1126 = vmatprep.mubr.f32.mxu1 %v3173_v0 }
 0x1d8   : > { %2935 = vmatmul.mubr.msk.f32.gmra.mxu0 %vm714_vm1, %v923_v9  ;;  %2939 = vmatmul.mubr.msk.f32.gmra.mxu1 %vm714_vm1, %v923_v9 }
 0x1d9   : > { %1043 = vmatprep.mubr.f32.mxu0 %v3173_v0  ;;  %1132 = vmatprep.mubr.f32.mxu1 %v3173_v0 }
 0x1dc   : > { %2936 = vmatmul.mubr.msk.f32.gmra.mxu0 %vm714_vm1, %v924_v10  ;;  %2940 = vmatmul.mubr.msk.f32.gmra.mxu1 %vm714_vm1, %v924_v10 }
 0x1dd   : > { %1249 = vmatprep.mubr.f32.mxu0 %v3173_v0  ;;  %1332 = vmatprep.mubr.f32.mxu1 %v3173_v0 }
 0x290   : > { %v1027_v11 = vpop.f32.mrf.mxu0  ;;  %v1116_v12 = vpop.f32.mrf.mxu1 }
 0x291   : > { %v1028_v51 = vadd.f32 %v1027_v11, %v932_v42  ;;  %v1117_v52 = vadd.f32 %v1116_v12, %v932_v42 }
 0x292   : > { %v1029_v13 = vpop.f32.mrf.mxu0  ;;  %v1118_v14 = vpop.f32.mrf.mxu1 }
 0x293   : > { %v1030_v47 = vadd.f32 %v1029_v13, %v932_v42  ;;  %v1119_v48 = vadd.f32 %v1118_v14, %v932_v42  ;;  %v1139_v61 = vmax.f32 %v1028_v51, 0.0  ;;  %v1141_v62 = vmax.f32 %v1117_v52, 0.0 }
 0x294   : > { %v1033_v15 = vpop.f32.mrf.mxu0  ;;  %v1122_v16 = vpop.f32.mrf.mxu1 }
 0x295   : > { %v1034_v43 = vadd.f32 %v1033_v15, %v937_v35  ;;  %v1123_v44 = vadd.f32 %v1122_v16, %v937_v35  ;;  %v1140_v59 = vmax.f32 %v1030_v47, 0.0  ;;  %v1142_v60 = vmax.f32 %v1119_v48, 0.0  ;;  %v1169_v16 = vpop.permute.xlu1 %1168 }
 0x296   : > { %v1035_v17 = vpop.f32.mrf.mxu0  ;;  %v1124_v18 = vpop.f32.mrf.mxu1 }
 0x297   : > { %v1036_v38 = vadd.f32 %v1035_v17, %v937_v35  ;;  %v1125_v39 = vadd.f32 %v1124_v18, %v937_v35  ;;  %v1143_v57 = vmax.f32 %v1034_v43, 0.0  ;;  %v1145_v58 = vmax.f32 %v1123_v44, 0.0 }
 0x298   : > { %v1039_v19 = vpop.f32.mrf.mxu0  ;;  %v1128_v20 = vpop.f32.mrf.mxu1 }
 0x299   : > { %v1040_v36 = vadd.f32 %v1039_v19, %v942_v24  ;;  %v1129_v37 = vadd.f32 %v1128_v20, %v942_v24  ;;  %v1144_v55 = vmax.f32 %v1036_v38, 0.0  ;;  %v1146_v56 = vmax.f32 %v1125_v39, 0.0 }
 0x29a   : > { %v1041_v22 = vpop.f32.mrf.mxu0  ;;  %v1130_v23 = vpop.f32.mrf.mxu1 }
 0x29b   : > { %v1042_v31 = vadd.f32 %v1041_v22, %v942_v24  ;;  %v1131_v32 = vadd.f32 %v1130_v23, %v942_v24  ;;  %v1147_v53 = vmax.f32 %v1040_v36, 0.0  ;;  %v1149_v54 = vmax.f32 %v1129_v37, 0.0 }
 0x29c   : > { %v1045_v25 = vpop.f32.mrf.mxu0  ;;  %v1134_v26 = vpop.f32.mrf.mxu1 }
 0x29d   : > { %v1046_v27 = vadd.f32 %v1045_v25, %v947_v21  ;;  %v1135_v28 = vadd.f32 %v1134_v26, %v947_v21  ;;  %v1148_v49 = vmax.f32 %v1042_v31, 0.0  ;;  %v1150_v50 = vmax.f32 %v1131_v32, 0.0 }
 0x29e   : > { %v1047_v29 = vpop.f32.mrf.mxu0  ;;  %v1136_v30 = vpop.f32.mrf.mxu1 }
 0x29f   : > { %v1048_v33 = vadd.f32 %v1047_v29, %v947_v21  ;;  %v1137_v34 = vadd.f32 %v1136_v30, %v947_v21  ;;  %v1151_v45 = vmax.f32 %v1046_v27, 0.0  ;;  %v1153_v46 = vmax.f32 %v1135_v28, 0.0 }
 0x2a1   : > { %v1152_v40 = vmax.f32 %v1048_v33, 0.0  ;;  %v1154_v41 = vmax.f32 %v1137_v34, 0.0 }
 0x2a3   : > { %1209 = vmatprep.subr.mxu0 %v1152_v40  ;;  %1292 = vmatprep.subr.mxu1 %v1154_v41 }
 0x2a4   : > { %1210 = vmatpush1.msra.mxu0 %v1151_v45  ;;  %1293 = vmatpush1.msra.mxu1 %v1153_v46 }
 0x2a5   : > { %1211 = vmatprep.subr.mxu0 %v1148_v49  ;;  %1294 = vmatprep.subr.mxu1 %v1150_v50 }
 0x2a6   : > { %1212 = vmatpush1.msra.mxu0 %v1147_v53  ;;  %1295 = vmatpush1.msra.mxu1 %v1149_v54 }
 0x2a7   : > { %1213 = vmatprep.subr.mxu0 %v1144_v55  ;;  %1296 = vmatprep.subr.mxu1 %v1146_v56 }
 0x2a8   : > { %1214 = vmatpush1.msra.mxu0 %v1143_v57  ;;  %1297 = vmatpush1.msra.mxu1 %v1145_v58 }
 0x2a9   : > { %1215 = vmatprep.subr.mxu0 %v1140_v59  ;;  %1298 = vmatprep.subr.mxu1 %v1142_v60 }
 0x2aa   : > { %1216 = vmatpush1.msra.mxu0 %v1139_v61  ;;  %1299 = vmatpush1.msra.mxu1 %v1141_v62 }
 0x2ab   : > { %2941 = vmatmul.mubr.msk.f32.vlgmr.msra.gmra.mxu0 %vm714_vm1, %v1155_v63  ;;  %2944 = vmatmul.mubr.msk.f32.vlgmr.msra.gmra.mxu1 %vm714_vm1, %v1155_v63 }
 0x2ac   : > { %1255 = vmatprep.mubr.f32.mxu0 %v3173_v0  ;;  %1338 = vmatprep.mubr.f32.mxu1 %v3173_v0 }
 0x2af   : > { %2942 = vmatmul.mubr.msk.f32.gmra.mxu0 %vm714_vm1, %v1156_v1  ;;  %2945 = vmatmul.mubr.msk.f32.gmra.mxu1 %vm714_vm1, %v1156_v1 }
 0x2b0   : > { %1261 = vmatprep.mubr.f32.mxu0 %v3173_v0  ;;  %1344 = vmatprep.mubr.f32.mxu1 %v3173_v0 }
 0x2b3   : > { %2943 = vmatmul.mubr.msk.f32.gmra.mxu0 %vm714_vm1, %v1157_v2  ;;  %2946 = vmatmul.mubr.msk.f32.gmra.mxu1 %vm714_vm1, %v1157_v2  ;;  %vm2167_vm1 = vcmask 1040384  }
 0x2b4   : > { %1599 = vmatprep.mubr.f32.mxu0 %v3173_v0  ;;  %1676 = vmatprep.mubr.f32.mxu1 %v3173_v0 }
 0x36b   : > { %v1251_v4 = vpop.f32.mrf.mxu0  ;;  %v1334_v5 = vpop.f32.mrf.mxu1 }
 0x36c   : > { %v1252_v6 = vadd.f32 %v1251_v4, %v1164_v3  ;;  %v1335_v7 = vadd.f32 %v1334_v5, %v1164_v3 }
 0x36d   : > { %v1253_v8 = vpop.f32.mrf.mxu0  ;;  %v1336_v9 = vpop.f32.mrf.mxu1 }
 0x36e   : > { %v1351_v10 = vrot.slane %v1252_v6, 4  ;;  %v1363_v11 = vrot.slane %v1335_v7, 4  ;;  %v1254_v12 = vadd.f32 %v1253_v8, %v1164_v3  ;;  %v1337_v13 = vadd.f32 %v1336_v9, %v1164_v3 }
 0x36f   : > { %v1257_v14 = vpop.f32.mrf.mxu0  ;;  %v1340_v15 = vpop.f32.mrf.mxu1 }
 0x370   : > { %v1352_v17 = vmax.f32 %v1252_v6, %v1351_v10  ;;  %v1364_v18 = vmax.f32 %v1335_v7, %v1363_v11  ;;  %v1357_v19 = vrot.slane %v1254_v12, 4  ;;  %v1369_v20 = vrot.slane %v1337_v13, 4 }
 0x371   : > { %v1258_v21 = vadd.f32 %v1257_v14, %v1169_v16  ;;  %v1341_v22 = vadd.f32 %v1340_v15, %v1169_v16  ;;  %v1259_v23 = vpop.f32.mrf.mxu0  ;;  %v1342_v24 = vpop.f32.mrf.mxu1 }
 0x372   : > { %v1353_v25 = vrot.slane %v1352_v17, 2  ;;  %v1365_v26 = vrot.slane %v1364_v18, 2  ;;  %v1358_v27 = vmax.f32 %v1254_v12, %v1357_v19  ;;  %v1370_v28 = vmax.f32 %v1337_v13, %v1369_v20 }
 0x373   : > { %v1439_v29 = vrot.slane %v1258_v21, 4  ;;  %v1451_v30 = vrot.slane %v1341_v22, 4  ;;  %v1260_v31 = vadd.f32 %v1259_v23, %v1169_v16  ;;  %v1343_v32 = vadd.f32 %v1342_v24, %v1169_v16 }
 0x374   : > { %v1354_v33 = vmax.f32 %v1352_v17, %v1353_v25  ;;  %v1366_v34 = vmax.f32 %v1364_v18, %v1365_v26  ;;  %v1359_v35 = vrot.slane %v1358_v27, 2  ;;  %v1371_v36 = vrot.slane %v1370_v28, 2 }
 0x375   : > { %v1440_v37 = vmax.f32 %v1258_v21, %v1439_v29  ;;  %v1452_v38 = vmax.f32 %v1341_v22, %v1451_v30  ;;  %v1445_v39 = vrot.slane %v1260_v31, 4  ;;  %v1457_v40 = vrot.slane %v1343_v32, 4 }
 0x376   : > { %v1355_v41 = vrot.slane %v1354_v33, 1  ;;  %v1367_v42 = vrot.slane %v1366_v34, 1  ;;  %v1360_v43 = vmax.f32 %v1358_v27, %v1359_v35  ;;  %v1372_v44 = vmax.f32 %v1370_v28, %v1371_v36 }
 0x377   : > { %v1441_v45 = vrot.slane %v1440_v37, 2  ;;  %v1453_v46 = vrot.slane %v1452_v38, 2  ;;  %v1446_v47 = vmax.f32 %v1260_v31, %v1445_v39  ;;  %v1458_v48 = vmax.f32 %v1343_v32, %v1457_v40 }
 0x378   : > { %v1356_v49 = vmax.f32 %v1354_v33, %v1355_v41  ;;  %v1368_v50 = vmax.f32 %v1366_v34, %v1367_v42  ;;  %v1361_v51 = vrot.slane %v1360_v43, 1  ;;  %v1373_v52 = vrot.slane %v1372_v44, 1 }
 0x379   : > { %v1442_v53 = vmax.f32 %v1440_v37, %v1441_v45  ;;  %v1454_v54 = vmax.f32 %v1452_v38, %v1453_v46  ;;  %v1447_v55 = vrot.slane %v1446_v47, 2  ;;  %v1459_v56 = vrot.slane %v1458_v48, 2 }
 0x37a   : > { %v1375_v57 = vsub.f32 %v1252_v6, %v1356_v49  ;;  %v1377_v58 = vsub.f32 %v1335_v7, %v1368_v50  ;;  %v1362_v59 = vmax.f32 %v1360_v43, %v1361_v51  ;;  %v1374_v60 = vmax.f32 %v1372_v44, %v1373_v52 }
 0x37b   : > { %v1443_v61 = vrot.slane %v1442_v53, 1  ;;  %v1455_v62 = vrot.slane %v1454_v54, 1  ;;  %v1448_v63 = vmax.f32 %v1446_v47, %v1447_v55  ;;  %v1460_v1 = vmax.f32 %v1458_v48, %v1459_v56 }
 0x37c   : > { %v1379_v2 = vmul.f32 1.442695, %v1375_v57  ;;  %v1383_v3 = vmul.f32 1.442695, %v1377_v58  ;;  %v1376_v4 = vsub.f32 %v1254_v12, %v1362_v59  ;;  %v1378_v5 = vsub.f32 %v1337_v13, %v1374_v60 }
 0x37d   : > { %v1444_v8 = vmax.f32 %v1442_v53, %v1443_v61  ;;  %v1456_v9 = vmax.f32 %v1454_v54, %v1455_v62  ;;  %v1449_v10 = vrot.slane %v1448_v63, 1  ;;  %v1461_v11 = vrot.slane %v1460_v1, 1 }
 0x37e   : > { %3022 = vpow2.f32 %v1379_v2  ;;  %v1381_v14 = vmul.f32 1.442695, %v1376_v4  ;;  %v1385_v15 = vmul.f32 1.442695, %v1378_v5 }
 0x37f   : > { %3024 = vpow2.f32 %v1383_v3  ;;  %v1463_v6 = vsub.f32 %v1258_v21, %v1444_v8  ;;  %v1465_v7 = vsub.f32 %v1341_v22, %v1456_v9  ;;  %v1450_v16 = vmax.f32 %v1448_v63, %v1449_v10 }
 0x380   : > { %3026 = vpow2.f32 %v1381_v14  ;;  %v1462_v17 = vmax.f32 %v1460_v1, %v1461_v11 }
 0x381   : > { %3028 = vpow2.f32 %v1385_v15  ;;  %v1467_v18 = vmul.f32 1.442695, %v1463_v6  ;;  %v1471_v19 = vmul.f32 1.442695, %v1465_v7  ;;  %v1464_v20 = vsub.f32 %v1260_v31, %v1450_v16 }
 0x382   : > { %v1466_v23 = vsub.f32 %v1343_v32, %v1462_v17 }
 0x383   : > { %3030 = vpow2.f32 %v1467_v18  ;;  %v1469_v12 = vmul.f32 1.442695, %v1464_v20 }
 0x384   : > { %3032 = vpow2.f32 %v1471_v19  ;;  %v1473_v13 = vmul.f32 1.442695, %v1466_v23 }
 0x385   : > { %3034 = vpow2.f32 %v1469_v12 }
 0x386   : > { %3036 = vpow2.f32 %v1473_v13 }
 0x38b   : > { %v3449_v24 = vpop.eup %3022 }
 0x38c   : > { %v3451_v25 = vpop.eup %3024  ;;  %v1387_v21 = vrot.slane %v3449_v24, 4 }
 0x38d   : > { %v3454_v22 = vpop.eup %3026  ;;  %v1399_v26 = vrot.slane %v3451_v25, 4 }
 0x38e   : > { %v3457_v27 = vpop.eup %3028  ;;  %v1393_v28 = vrot.slane %v3454_v22, 4  ;;  %v1388_v29 = vadd.f32 %v3449_v24, %v1387_v21 }
 0x38f   : > { %v1405_v30 = vrot.slane %v3457_v27, 4  ;;  %v1400_v31 = vadd.f32 %v3451_v25, %v1399_v26 }
 0x390   : > { %v3463_v32 = vpop.eup %3030  ;;  %v1394_v33 = vadd.f32 %v3454_v22, %v1393_v28  ;;  %v1389_v34 = vrot.slane %v1388_v29, 2 }
 0x391   : > { %v3466_v35 = vpop.eup %3032  ;;  %v1406_v36 = vadd.f32 %v3457_v27, %v1405_v30  ;;  %v1401_v37 = vrot.slane %v1400_v31, 2  ;;  %v1475_v38 = vrot.slane %v3463_v32, 4 }
 0x392   : > { %v3470_v39 = vpop.eup %3034  ;;  %v1395_v40 = vrot.slane %v1394_v33, 2  ;;  %v1390_v41 = vadd.f32 %v1389_v34, %v1388_v29  ;;  %v1487_v42 = vrot.slane %v3466_v35, 4 }
 0x393   : > { %v3473_v43 = vpop.eup %3036  ;;  %v1407_v44 = vrot.slane %v1406_v36, 2  ;;  %v1402_v45 = vadd.f32 %v1401_v37, %v1400_v31  ;;  %v1481_v46 = vrot.slane %v3470_v39, 4  ;;  %v1476_v47 = vadd.f32 %v3463_v32, %v1475_v38 }
 0x394   : > { %v1396_v48 = vadd.f32 %v1395_v40, %v1394_v33  ;;  %v1391_v49 = vrot.slane %v1390_v41, 1  ;;  %v1493_v50 = vrot.slane %v3473_v43, 4  ;;  %v1488_v51 = vadd.f32 %v3466_v35, %v1487_v42 }
 0x395   : > { %v1408_v52 = vadd.f32 %v1407_v44, %v1406_v36  ;;  %v1403_v53 = vrot.slane %v1402_v45, 1  ;;  %v1482_v54 = vadd.f32 %v3470_v39, %v1481_v46  ;;  %v1477_v55 = vrot.slane %v1476_v47, 2 }
 0x396   : > { %v1397_v56 = vrot.slane %v1396_v48, 1  ;;  %v1392_v57 = vadd.f32 %v1391_v49, %v1390_v41  ;;  %v1494_v58 = vadd.f32 %v3473_v43, %v1493_v50  ;;  %v1489_v59 = vrot.slane %v1488_v51, 2 }
 0x397   : > { %v1409_v60 = vrot.slane %v1408_v52, 1  ;;  %v1404_v61 = vadd.f32 %v1403_v53, %v1402_v45  ;;  %v1483_v62 = vrot.slane %v1482_v54, 2  ;;  %v1478_v63 = vadd.f32 %v1477_v55, %v1476_v47 }
 0x398   : > { %v1398_v1 = vadd.f32 %v1397_v56, %v1396_v48  ;;  %3038 = vrcp.f32 %v1392_v57  ;;  %v1495_v2 = vrot.slane %v1494_v58, 2  ;;  %v1490_v3 = vadd.f32 %v1489_v59, %v1488_v51 }
 0x399   : > { %v1410_v4 = vadd.f32 %v1409_v60, %v1408_v52  ;;  %3040 = vrcp.f32 %v1404_v61  ;;  %v1484_v5 = vadd.f32 %v1483_v62, %v1482_v54  ;;  %v1479_v8 = vrot.slane %v1478_v63, 1 }
 0x39a   : > { %3042 = vrcp.f32 %v1398_v1  ;;  %v1496_v9 = vadd.f32 %v1495_v2, %v1494_v58  ;;  %v1491_v10 = vrot.slane %v1490_v3, 1 }
 0x39b   : > { %3044 = vrcp.f32 %v1410_v4  ;;  %v1485_v11 = vrot.slane %v1484_v5, 1  ;;  %v1480_v14 = vadd.f32 %v1479_v8, %v1478_v63 }
 0x39c   : > { %v1497_v15 = vrot.slane %v1496_v9, 1  ;;  %v1492_v6 = vadd.f32 %v1491_v10, %v1490_v3 }
 0x39d   : > { %v1486_v7 = vadd.f32 %v1485_v11, %v1484_v5  ;;  %3046 = vrcp.f32 %v1480_v14 }
 0x39e   : > { %v1498_v16 = vadd.f32 %v1497_v15, %v1496_v9  ;;  %3048 = vrcp.f32 %v1492_v6  ;;  %v3511_v15 = vpop.f32.mrf.mxu1 }
 0x39f   : > { %3050 = vrcp.f32 %v1486_v7 }
 0x3a0   : > { %3052 = vrcp.f32 %v1498_v16 }
 0x3a5   : > { %v3039_v17 = vpop.eup %3038 }
 0x3a6   : > { %v3041_v18 = vpop.eup %3040  ;;  %v1415_v19 = vmul.f32 %v3039_v17, %v1392_v57 }
 0x3a7   : > { %v3043_v20 = vpop.eup %3042  ;;  %v1417_v23 = vmul.f32 %v3041_v18, %v1404_v61 }
 0x3a8   : > { %v3045_v12 = vpop.eup %3044  ;;  %v1416_v13 = vmul.f32 %v3043_v20, %v1398_v1  ;;  %v1419_v21 = vsub.f32 2.0, %v1415_v19  ;;  %v4112_v19 = vlaneseq }
 0x3a9   : > { %v1418_v26 = vmul.f32 %v3045_v12, %v1410_v4  ;;  %v1421_v28 = vsub.f32 2.0, %v1417_v23 }
 0x3aa   : > { %v3047_v29 = vpop.eup %3046  ;;  %v1420_v30 = vsub.f32 2.0, %v1416_v13  ;;  %v1423_v31 = vmul.f32 %v3039_v17, %v1419_v21  ;;  %v3532_v13 = vshrl.u32 %v4112_v19, 7 }
 0x3ab   : > { %v3049_v33 = vpop.eup %3048  ;;  %v1422_v34 = vsub.f32 2.0, %v1418_v26  ;;  %v1425_v36 = vmul.f32 %v3041_v18, %v1421_v28  ;;  %v1503_v37 = vmul.f32 %v3047_v29, %v1480_v14  ;;  %v3509_v14 = vpop.f32.mrf.mxu0  ;;  %v446_v26 = vld [vmem:[%s3527_s16] sm:$0xf] }
 0x3ac   : > { %v3051_v38 = vpop.eup %3050  ;;  %v1424_v40 = vmul.f32 %v3043_v20, %v1420_v30  ;;  %v1427_v41 = vmul.f32 %v3449_v24, %v1423_v31  ;;  %v1505_v42 = vmul.f32 %v3049_v33, %v1492_v6 }
 0x3ad   : > { %v3053_v44 = vpop.eup %3052  ;;  %v1426_v45 = vmul.f32 %v3045_v12, %v1422_v34  ;;  %v1429_v46 = vmul.f32 %v3451_v25, %v1425_v36  ;;  %v1504_v47 = vmul.f32 %v3051_v38, %v1486_v7  ;;  %v1507_v48 = vsub.f32 2.0, %v1503_v37  ;;  %v3513_v6 = vpop.f32.mrf.mxu0 }
 0x3ae   : > { %v1428_v49 = vmul.f32 %v3454_v22, %v1424_v40  ;;  %v1506_v50 = vmul.f32 %v3053_v44, %v1498_v16  ;;  %v1509_v51 = vsub.f32 2.0, %v1505_v42  ;;  %v1431_v53 = vmul.f32 0.992, %v1427_v41  ;;  %v3515_v7 = vpop.f32.mrf.mxu1 }
 0x3af   : > { %v1430_v52 = vmul.f32 %v3457_v27, %v1426_v45  ;;  %v1508_v54 = vsub.f32 2.0, %v1504_v47  ;;  %v1511_v55 = vmul.f32 %v3047_v29, %v1507_v48  ;;  %v1433_v57 = vmul.f32 0.992, %v1429_v46  ;;  %v1527_v27 = vld [vmem:[%s4108_s10] sm:$0xff] }
 0x3b0   : > { %v1432_v56 = vmul.f32 0.992, %v1428_v49  ;;  %v1510_v58 = vsub.f32 2.0, %v1506_v50  ;;  %v1513_v24 = vmul.f32 %v3049_v33, %v1509_v51  ;;  %v1435_v1 = vadd.f32 0.001, %v1431_v53 }
 0x3b1   : > { %v1434_v59 = vmul.f32 0.992, %v1430_v52  ;;  %v1512_v60 = vmul.f32 %v3051_v38, %v1508_v54  ;;  %v1515_v61 = vmul.f32 %v3463_v32, %v1511_v55  ;;  %v1437_v3 = vadd.f32 0.001, %v1433_v57 }
 0x3b2   : > { %v1436_v25 = vadd.f32 0.001, %v1432_v56  ;;  %v1514_v62 = vmul.f32 %v3053_v44, %v1510_v58  ;;  %v1517_v63 = vmul.f32 %v3466_v35, %v1513_v24  ;;  %v1845_v29 = vadd.s32 8, %v3532_v13 }
 0x3b3   : > { %v1438_v22 = vadd.f32 0.001, %v1434_v59  ;;  %v1516_v2 = vmul.f32 %v3470_v39, %v1512_v60  ;;  %v1519_v5 = vmul.f32 0.992, %v1515_v61  ;;  %v3544_v33 = vclamps-f32 %v446_v26, 5.0 }
 0x3b4   : > { %1565 = vmatprep.subr.mxu0 %v1436_v25  ;;  %v1518_v4 = vmul.f32 %v3473_v43, %v1514_v62  ;;  %v1521_v8 = vmul.f32 0.992, %v1517_v63  ;;  %v1528_v43 = vld [vmem:[%s4108_s10 + $0x8] sm:$0xff]  ;;  %v3549_v36 = vsub.s32 0, %v3532_v13  ;;  %v3554_v38 = vsub.s32 2, %v3532_v13 }
 0x3b5   : > { %1642 = vmatprep.subr.mxu1 %v1438_v22  ;;  %1566 = vmatpush1.msra.mxu0 %v1435_v1  ;;  %v1520_v32 = vmul.f32 0.992, %v1516_v2  ;;  %v1523_v39 = vadd.f32 0.001, %v1519_v5  ;;  %v1847_v40 = vcvt.s32.f32 %v1845_v29  ;;  %v3557_v42 = vsub.s32 1, %v3532_v13 }
 0x3b6   : > { %1643 = vmatpush1.msra.mxu1 %v1437_v3  ;;  %2947 = vmatmul.mubr.msk.f32.vlgmr.msra.gmra.mxu0 %vm479_vm0, %v1527_v27  ;;  %v1522_v35 = vmul.f32 0.992, %v1518_v4  ;;  %v1525_v11 = vadd.f32 0.001, %v1521_v8  ;;  %v3560_v46 = vcvt.s32.f32 %v3532_v13  ;;  %v1912_v47 = vrot.slane %v3544_v33, %v3549_v36 }
 0x3b7   : > { %2949 = vmatmul.mubr.msk.f32.vlgmr.msra.gmra.mxu1 %vm479_vm0, %v1527_v27  ;;  %v1524_v9 = vadd.f32 0.001, %v1520_v32  ;;  %1605 = vmatprep.mubr.f32.mxu0 %v3173_v0  ;;  %v1920_v51 = vrot.slane %v3544_v33, %v3554_v38  ;;  %vm3566_vm2 = vcmp.eq.f32.partialorder %v1847_v40, 15.0  ;;  %v1916_v55 = vrot.slane %v3544_v33, %v3557_v42 }
 0x3b8   : > { %v1526_v10 = vadd.f32 0.001, %v1522_v35  ;;  %1682 = vmatprep.mubr.f32.mxu1 %v3173_v0  ;;  %vm1907_vm3 = vcmp.lt.f32.partialorder %v3560_v46, 7.0  ;;  %v3598_v35 = vsub.s32 3, %v3532_v13  ;;  %vm1848_vm10 = vcmp.eq.f32.partialorder %v3560_v46, 15.0 }
 0x3b9   : > { %1719 = vmatprep.subr.mxu0 %v1524_v9  ;;  %v3175_v40 = vmov 1966171168  }
 0x3ba   : > { %1796 = vmatprep.subr.mxu1 %v1526_v10  ;;  %1720 = vmatpush1.msra.mxu0 %v1523_v39 }
 0x3bb   : > { %1797 = vmatpush1.msra.mxu1 %v1525_v11  ;;  %2948 = vmatmul.mubr.msk.f32.gmra.mxu0 %vm479_vm0, %v1528_v43 }
 0x3bc   : > { %2950 = vmatmul.mubr.msk.f32.gmra.mxu1 %vm479_vm0, %v1528_v43  ;;  %1753 = vmatprep.mubr.f32.mxu0 %v3173_v0 }
 0x3bd   : > { %1830 = vmatprep.mubr.f32.mxu1 %v3173_v0 }
 0x3bf   : > { %2951 = vmatmul.mubr.msk.f32.vlgmr.msra.gmra.mxu0 %vm479_vm0, %v1527_v27 }
 0x3c0   : > { %2953 = vmatmul.mubr.msk.f32.vlgmr.msra.gmra.mxu1 %vm479_vm0, %v1527_v27  ;;  %1759 = vmatprep.mubr.f32.mxu0 %v3173_v0 }
 0x3c1   : > { %1836 = vmatprep.mubr.f32.mxu1 %v3173_v0 }
 0x3c3   : > { %2952 = vmatmul.mubr.msk.f32.gmra.mxu0 %vm479_vm0, %v1528_v43 }
 0x3c4   : > { %2954 = vmatmul.mubr.msk.f32.gmra.mxu1 %vm479_vm0, %v1528_v43  ;;  %v1174_v43 = vpop.permute.xlu0 %1173 }
 0x3c5   : > { %v1264_v29 = vadd.f32 %v3509_v14, %v1174_v43 }
 0x476   : > { %v1601_v16 = vpop.f32.mrf.mxu0 }
 0x477   : > { %v3517_v17 = vpop.f32.mrf.mxu1  ;;  %v1850_v2 = vmul.f32 10.0, %v1601_v16 }
 0x478   : > { %v3519_v18 = vpop.f32.mrf.mxu0 }
 0x479   : > { %v3521_v20 = vpop.f32.mrf.mxu1  ;;  %v1858_v11 = vadd.f32 -5.0, %v1850_v2 }
 0x47b   : > { %v1607_v23 = vpop.f32.mrf.mxu0 }
 0x47c   : > { %v3529_v12 = vpop.f32.mrf.mxu1  ;;  %v1854_v3 = vmul.f32 10.0, %v1607_v23  ;;  %v3605_v23 = vadd.f32 %v3511_v15, %v1174_v43  ;;  %v1870_v15 = vsel %vm1848_vm10, 5.0, %v1858_v11 }
 0x47d   : > { %v3534_v21 = vpop.f32.mrf.mxu0 }
 0x47e   : > { %v3537_v28 = vpop.f32.mrf.mxu1  ;;  %v1862_v26 = vadd.f32 -5.0, %v1854_v3 }
 0x47f   : > { %v3540_v30 = vpop.f32.mrf.mxu0 }
 0x480   : > { %v3542_v31 = vpop.f32.mrf.mxu1 }
 0x481   : > { %v3546_v34 = vpop.f32.mrf.mxu0 }
 0x482   : > { %v3551_v37 = vpop.f32.mrf.mxu1 }
 0x483   : > { %v1761_v41 = vpop.f32.mrf.mxu0 }
 0x484   : > { %v1882_v44 = vmul.f32 10.0, %v1761_v41  ;;  %v1838_v45 = vpop.f32.mrf.mxu1  ;;  %v2280_v41 = vunpack.c.l.s4 %v3175_v40 }
 0x485   : > { %v1884_v48 = vmul.f32 10.0, %v1838_v45  ;;  %v1763_v49 = vpop.f32.mrf.mxu0  ;;  %v1924_v45 = vrot.slane %v3544_v33, %v3598_v35 }
 0x486   : > { %v1890_v50 = vadd.f32 -5.0, %v1882_v44  ;;  %v1883_v52 = vmul.f32 10.0, %v1763_v49  ;;  %v1840_v62 = vpop.f32.mrf.mxu1  ;;  %v1852_v49 = vmul.f32 10.0, %v3517_v17 }
 0x487   : > { %v1892_v54 = vadd.f32 -5.0, %v1884_v48  ;;  %v1885_v27 = vmul.f32 10.0, %v1840_v62 }
 0x488   : > { %v3575_v56 = vsel %vm3566_vm2, 5.0, %v1890_v50  ;;  %v1891_v57 = vadd.f32 -5.0, %v1883_v52  ;;  %v1874_v50 = vsel %vm3566_vm2, 5.0, %v1862_v26  ;;  %v1851_v52 = vmul.f32 10.0, %v3519_v18 }
 0x489   : > { %vm1929_vm4 = vcmp.ge.f32.partialorder %v1912_v47, %v3575_v56  ;;  %v3580_v58 = vsel %vm3566_vm2, 5.0, %v1892_v54  ;;  %v1893_v39 = vadd.f32 -5.0, %v1885_v27  ;;  %v3633_v18 = vadd.f32 %v3513_v6, %v1174_v43 }
 0x48a   : > { %vm1935_vm5 = vmand %vm1929_vm4, %vm1907_vm3  ;;  %vm1931_vm6 = vcmp.ge.f32.partialorder %v1920_v51, %v3580_v58  ;;  %v3587_v24 = vsel %vm3566_vm2, 5.0, %v1891_v57  ;;  %v1860_v2 = vadd.f32 -5.0, %v1852_v49  ;;  %v1859_v3 = vadd.f32 -5.0, %v1851_v52 }
 0x48b   : > { %v2956_v59 = vsel %vm1935_vm5, 1.0, %v3173_v0  ;;  %vm1937_vm7 = vmand %vm1931_vm6, %vm1907_vm3  ;;  %vm1930_vm8 = vcmp.ge.f32.partialorder %v1916_v55, %v3587_v24  ;;  %v3614_v14 = vsel %vm3566_vm2, 5.0, %v1893_v39  ;;  %v3645_v26 = vadd.f32 %v3515_v7, %v1174_v43 }
 0x48c   : > { %v1947_v60 = vrot.slane %v2956_v59, 4  ;;  %v2958_v61 = vsel %vm1937_vm7, 1.0, %v3173_v0  ;;  %vm1936_vm9 = vmand %vm1930_vm8, %vm1907_vm3  ;;  %vm3628_vm13 = vcmp.ge.f32.partialorder %v1924_v45, %v3614_v14  ;;  %v1871_v45 = vsel %vm1848_vm10, 5.0, %v1859_v3 }
 0x48d   : > { %v1959_v25 = vrot.slane %v2958_v61, 4  ;;  %v2957_v5 = vsel %vm1936_vm9, 1.0, %v3173_v0  ;;  %vm1938_vm14 = vmand %vm3628_vm13, %vm1907_vm3 }
 0x48e   : > { %v1948_v63 = vadd.f32 %v2956_v59, %v1947_v60  ;;  %v1953_v10 = vrot.slane %v2957_v5, 4 }
 0x48f   : > { %v1960_v22 = vadd.f32 %v2958_v61, %v1959_v25 }
 0x490   : > { %v1949_v1 = vrot.slane %v1948_v63, 2  ;;  %v1954_v48 = vadd.f32 %v2957_v5, %v1953_v10 }
 0x491   : > { %v1961_v4 = vrot.slane %v1960_v22, 2 }
 0x492   : > { %v1950_v32 = vadd.f32 %v1949_v1, %v1948_v63  ;;  %v1955_v63 = vrot.slane %v1954_v48, 2  ;;  %v1853_v1 = vmul.f32 10.0, %v3521_v20 }
 0x493   : > { %v1962_v8 = vadd.f32 %v1961_v4, %v1960_v22  ;;  %v2281_v22 = vunpack.c.0.s8 %v2280_v41  ;;  %v1878_v4 = vmul.f32 10.0, %v3540_v30 }
 0x494   : > { %v1951_v9 = vrot.slane %v1950_v32, 1  ;;  %v1956_v11 = vadd.f32 %v1955_v63, %v1954_v48 }
 0x495   : > { %v1963_v44 = vrot.slane %v1962_v8, 1  ;;  %v3648_v30 = vsub.s32 %v2281_v22, %v3532_v13  ;;  %v1886_v40 = vadd.f32 -5.0, %v1878_v4  ;;  %v3688_v4 = vmul.f32 10.0, %v3551_v37 }
 0x496   : > { %v3602_v16 = vadd.f32 %v1951_v9, %v1950_v32  ;;  %v1856_v32 = vmul.f32 10.0, %v3529_v12  ;;  %v1861_v12 = vadd.f32 -5.0, %v1853_v1  ;;  %v1879_v1 = vmul.f32 10.0, %v3546_v34 }
 0x497   : > { %v3625_v60 = vadd.f32 %v1963_v44, %v1962_v8  ;;  %v1855_v8 = vmul.f32 10.0, %v3534_v21  ;;  %v1857_v21 = vmul.f32 10.0, %v3537_v28  ;;  %v2959_v44 = vsel %vm1938_vm14, 1.0, %v3173_v0 }
 0x498   : > { %vm1971_vm11 = vcmp.eq.f32.partialorder %v3560_v46, %v3602_v16  ;;  %v2964_v47 = vadd.f32 -1.0, %v3602_v16  ;;  %v3661_v28 = vsel %vm1848_vm10, 5.0, %v1861_v12  ;;  %v1965_v52 = vrot.slane %v2959_v44, 4 }
 0x499   : > { %v2960_v51 = vsel %vm1971_vm11, 1.0, %v3173_v0  ;;  %v2966_v10 = vadd.f32 -1.0, %v3625_v60  ;;  %v3657_v7 = vadd.f32 -5.0, %v1855_v8  ;;  %v3663_v49 = vadd.f32 -5.0, %v1857_v21 }
 0x49a   : > { %vm1987_vm12 = vcmp.eq.f32.partialorder %v3560_v46, %v2964_v47  ;;  %v1999_v54 = vmul.f32 %v2960_v51, %v1870_v15  ;;  %v2027_v55 = vmul.f32 %v2960_v51, %v1874_v50  ;;  %v2139_v59 = vmul.f32 %v2960_v51, %v1264_v29 }
 0x49b   : > { %v2968_v57 = vsel %vm1987_vm12, 1.0, %v3173_v0  ;;  %v1864_v47 = vadd.f32 -5.0, %v1856_v32  ;;  %vm1989_vm15 = vcmp.eq.f32.partialorder %v3560_v46, %v2966_v10  ;;  %v1957_v15 = vrot.slane %v1956_v11, 1 }
 0x49c   : > { %v2003_v17 = vrot.slane %v1999_v54, 4  ;;  %v2031_v25 = vrot.slane %v2027_v55, 4  ;;  %v2111_v62 = vmul.f32 %v2968_v57, %v1264_v29  ;;  %v2143_v27 = vrot.slane %v2139_v59, 4 }
 0x49d   : > { %v1872_v29 = vsel %vm1848_vm10, 5.0, %v1860_v2  ;;  %v1880_v50 = vmul.f32 10.0, %v3542_v31  ;;  %vm1973_vm0 = vcmp.eq.f32.partialorder %v3560_v46, %v3625_v60  ;;  %v2970_v57 = vsel %vm1989_vm15, 1.0, %v3173_v0 }
 0x49e   : > { %v2115_v5 = vrot.slane %v2111_v62, 4  ;;  %v2004_v9 = vadd.f32 %v2003_v17, %v1999_v54  ;;  %v2032_v6 = vadd.f32 %v2031_v25, %v2027_v55  ;;  %v2144_v39 = vadd.f32 %v2143_v27, %v2139_v59 }
 0x49f   : > { %v1894_v54 = vsel %vm1848_vm10, 5.0, %v1886_v40  ;;  %v1876_v59 = vsel %vm3566_vm2, 5.0, %v1864_v47  ;;  %v2083_v25 = vmul.f32 %v2960_v51, %v3575_v56  ;;  %v1875_v31 = vsel %vm3566_vm2, 5.0, %v3657_v7 }
 0x4a0   : > { %v2116_v20 = vadd.f32 %v2115_v5, %v2111_v62  ;;  %v2005_v48 = vrot.slane %v2004_v9, 2  ;;  %v2033_v13 = vrot.slane %v2032_v6, 2  ;;  %v2145_v43 = vrot.slane %v2144_v39, 2 }
 0x4a1   : > { %v2055_v17 = vmul.f32 %v2960_v51, %v1894_v54  ;;  %v3677_v22 = vadd.f32 %v1957_v15, %v1956_v11  ;;  %v3681_v27 = vsel %vm1973_vm0, 1.0, %v3173_v0  ;;  %v2113_v2 = vmul.f32 %v2970_v57, %v3605_v23 }
 0x4a2   : > { %v2117_v41 = vrot.slane %v2116_v20, 2  ;;  %v2006_v61 = vadd.f32 %v2005_v48, %v2004_v9  ;;  %v2034_v62 = vadd.f32 %v2033_v13, %v2032_v6  ;;  %v2146_v63 = vadd.f32 %v2145_v43, %v2144_v39 }
 0x4a3   : > { %v1966_v3 = vadd.f32 %v2959_v44, %v1965_v52  ;;  %v1877_v56 = vsel %vm3566_vm2, 5.0, %v3663_v49  ;;  %v1888_v51 = vadd.f32 -5.0, %v1880_v50  ;;  %v2059_v8 = vrot.slane %v2055_v17, 4 }
 0x4a4   : > { %v2118_v55 = vadd.f32 %v2117_v41, %v2116_v20  ;;  %v2007_v32 = vrot.slane %v2006_v61, 1  ;;  %v2087_v9 = vrot.slane %v2083_v25, 4  ;;  %v2127_v10 = vrot.slane %v2113_v2, 4 }
 0x4a5   : > { %v2035_v34 = vrot.slane %v2034_v62, 1  ;;  %v2147_v6 = vrot.slane %v2146_v63, 1  ;;  %v2141_v20 = vmul.f32 %v3681_v27, %v3605_v23  ;;  %vm1972_vm3 = vcmp.eq.f32.partialorder %v3560_v46, %v3677_v22 }
 0x4a6   : > { %v2119_v5 = vrot.slane %v2118_v55, 1  ;;  %v1887_v39 = vadd.f32 -5.0, %v1879_v1  ;;  %v2001_v11 = vmul.f32 %v3681_v27, %v1872_v29  ;;  %v2961_v12 = vsel %vm1972_vm3, 1.0, %v3173_v0 }
 0x4a7   : > { %v1967_v37 = vrot.slane %v1966_v3, 2  ;;  %v2128_v40 = vadd.f32 %v2127_v10, %v2113_v2  ;;  %v2155_v41 = vrot.slane %v2141_v20, 4  ;;  %v2965_v44 = vadd.f32 -1.0, %v3677_v22 }
 0x4a8   : > { %v2120_v21 = vadd.f32 %v2119_v5, %v2118_v55  ;;  %v2060_v47 = vadd.f32 %v2059_v8, %v2055_v17  ;;  %v2088_v48 = vadd.f32 %v2087_v9, %v2083_v25  ;;  %v2029_v7 = vmul.f32 %v3681_v27, %v1876_v59 }
 0x4a9   : > { %v2000_v13 = vmul.f32 %v2961_v12, %v1871_v45  ;;  %v3698_v23 = vadd.f32 %v2007_v32, %v2006_v61  ;;  %v2036_v43 = vadd.f32 %v2035_v34, %v2034_v62  ;;  %v2148_v15 = vadd.f32 %v2147_v6, %v2146_v63 }
 0x4aa   : > { %vm1988_vm4 = vcmp.eq.f32.partialorder %v3560_v46, %v2965_v44  ;;  %v1896_v29 = vsel %vm1848_vm10, 5.0, %v1888_v51  ;;  %v1895_v50 = vsel %vm1848_vm10, 5.0, %v1887_v39  ;;  %v2156_v52 = vadd.f32 %v2155_v41, %v2141_v20 }
 0x4ab   : > { %v2009_v54 = vrot.slane %v2000_v13, 4  ;;  %v3706_v55 = vsel %vm2167_vm1, %v2120_v21, %v2148_v15  ;;  %v2015_v57 = vrot.slane %v2001_v11, 4  ;;  %v2129_v59 = vrot.slane %v2128_v40, 2 }
 0x4ac   : > { %v3708_v45 = vadd.f32 %v1967_v37, %v1966_v3  ;;  %v2969_v61 = vsel %vm1988_vm4, 1.0, %v3173_v0  ;;  %v2028_v25 = vmul.f32 %v2961_v12, %v1875_v31  ;;  %v2056_v62 = vmul.f32 %v2961_v12, %v1895_v50 }
 0x4ad   : > { %v2010_v17 = vadd.f32 %v2009_v54, %v2000_v13  ;;  %v2061_v63 = vrot.slane %v2060_v47, 2  ;;  %v2089_v1 = vrot.slane %v2088_v48, 2  ;;  %v3712_v2 = vsub.f32 %v2036_v43, %v3698_v23 }
 0x4ae   : > { %v2043_v51 = vrot.slane %v2029_v7, 4  ;;  %v2157_v5 = vrot.slane %v2156_v52, 2  ;;  %v2037_v8 = vrot.slane %v2028_v25, 4  ;;  %v2065_v9 = vrot.slane %v2056_v62, 4 }
 0x4af   : > { %v2011_v32 = vrot.slane %v2010_v17, 2  ;;  %v2181_v10 = vand.u32 2147483647, %v3706_v55  ;;  %v2016_v34 = vadd.f32 %v2015_v57, %v2001_v11  ;;  %v2130_v3 = vadd.f32 %v2129_v59, %v2128_v40 }
 0x4b0   : > { %v2112_v6 = vmul.f32 %v2969_v61, %v3633_v18  ;;  %v2038_v39 = vadd.f32 %v2037_v8, %v2028_v25  ;;  %v2066_v31 = vadd.f32 %v2065_v9, %v2056_v62  ;;  %v2140_v37 = vmul.f32 %v2961_v12, %v3633_v18 }
 0x4b1   : > { %v2012_v20 = vadd.f32 %v2011_v32, %v2010_v17  ;;  %3054 = vrcp.f32 %v3712_v2  ;;  %v2044_v21 = vadd.f32 %v2043_v51, %v2029_v7  ;;  %v2084_v41 = vmul.f32 %v2961_v12, %v3587_v24 }
 0x4b2   : > { %v2121_v44 = vrot.slane %v2112_v6, 4  ;;  %v2062_v13 = vadd.f32 %v2061_v63, %v2060_v47  ;;  %v2158_v43 = vadd.f32 %v2157_v5, %v2156_v52  ;;  %v2039_v15 = vrot.slane %v2038_v39, 2 }
 0x4b3   : > { %v2067_v50 = vrot.slane %v2066_v31, 2  ;;  %v2185_v54 = vsub.f32 0.0, %v2181_v10  ;;  %v2017_v11 = vrot.slane %v2016_v34, 2  ;;  %v2057_v40 = vmul.f32 %v3681_v27, %v1896_v29 }
 0x4b4   : > { %v2122_v57 = vadd.f32 %v2121_v44, %v2112_v6  ;;  %v2131_v59 = vrot.slane %v2130_v3, 1  ;;  %v2013_v61 = vrot.slane %v2012_v20, 1  ;;  %v2040_v17 = vadd.f32 %v2039_v15, %v2038_v39 }
 0x4b5   : > { %v2149_v25 = vrot.slane %v2140_v37, 4  ;;  %v2045_v18 = vrot.slane %v2044_v21, 2  ;;  %v2068_v62 = vadd.f32 %v2067_v50, %v2066_v31  ;;  %v2093_v32 = vrot.slane %v2084_v41, 4 }
 0x4b6   : > { %v2123_v7 = vrot.slane %v2122_v57, 2  ;;  %v2063_v51 = vrot.slane %v2062_v13, 1  ;;  %v2090_v24 = vadd.f32 %v2089_v1, %v2088_v48  ;;  %v2159_v12 = vrot.slane %v2158_v43, 1 }
 0x4b7   : > { %v2041_v47 = vrot.slane %v2040_v17, 1  ;;  %v2189_v52 = vmul.f32 1.442695, %v2185_v54  ;;  %v2018_v63 = vadd.f32 %v2017_v11, %v2016_v34  ;;  %v2071_v5 = vrot.slane %v2057_v40, 4 }
 0x4b8   : > { %v2069_v8 = vrot.slane %v2068_v62, 1  ;;  %v2132_v9 = vadd.f32 %v2131_v59, %v2130_v3  ;;  %v3720_v10 = vadd.f32 %v2013_v61, %v2012_v20  ;;  %v2124_v29 = vadd.f32 %v2123_v7, %v2122_v57 }
 0x4b9   : > { %v2150_v6 = vadd.f32 %v2149_v25, %v2140_v37  ;;  %v1889_v39 = vadd.f32 -5.0, %v3688_v4  ;;  %v2046_v44 = vadd.f32 %v2045_v18, %v2044_v21  ;;  %v2094_v15 = vadd.f32 %v2093_v32, %v2084_v41 }
 0x4ba   : > { %v1969_v31 = vrot.slane %v3708_v45, 1  ;;  %v3724_v50 = vadd.f32 %v2063_v51, %v2062_v13  ;;  %v2091_v48 = vrot.slane %v2090_v24, 1  ;;  %v2160_v1 = vadd.f32 %v2159_v12, %v2158_v43 }
 0x4bb   : > { %v2042_v19 = vadd.f32 %v2041_v47, %v2040_v17  ;;  %3056 = vpow2.f32 %v2189_v52  ;;  %v2019_v34 = vrot.slane %v2018_v63, 1  ;;  %v2072_v54 = vadd.f32 %v2071_v5, %v2057_v40 }
 0x4bc   : > { %v3726_v11 = vadd.f32 %v2069_v8, %v2068_v62  ;;  %v3729_v3 = vsel %vm2167_vm1, %v2132_v9, %v2160_v1  ;;  %v2125_v20 = vrot.slane %v2124_v29, 1  ;;  %v2151_v37 = vrot.slane %v2150_v6, 2 }
 0x4bd   : > { %v3732_v4 = vsub.f32 %v2042_v19, %v3720_v10  ;;  %v2047_v21 = vrot.slane %v2046_v44, 1  ;;  %v2095_v41 = vrot.slane %v2094_v15, 2  ;;  %v3737_v43 = vadd.f32 %v1969_v31, %v3708_v45 }
 0x4be   : > { %v2277_v13 = vcombine.low %v3724_v50, %v3726_v11  ;;  %v3055_v57 = vpop.eup %3054  ;;  %v1897_v40 = vsel %vm1848_vm10, 5.0, %v1889_v39  ;;  %v2092_v59 = vadd.f32 %v2091_v48, %v2090_v24  ;;  %v2152_v61 = vadd.f32 %v2151_v37, %v2150_v6 }
 0x4bf   : > { %3058 = vrcp.f32 %v3732_v4  ;;  %v3742_v17 = vadd.f32 %v2019_v34, %v2018_v63  ;;  %v2183_v19 = vand.u32 2147483647, %v3729_v3  ;;  %vm1974_vm5 = vcmp.eq.f32.partialorder %v3560_v46, %v3737_v43 }
 0x4c0   : > { %v2967_v25 = vadd.f32 -1.0, %v3737_v43  ;;  %v2073_v18 = vrot.slane %v2072_v54, 2  ;;  %v2126_v45 = vadd.f32 %v2125_v20, %v2124_v29  ;;  %v2153_v62 = vrot.slane %v2152_v61, 1 }
 0x4c1   : > { %v2963_v32 = vsel %vm1974_vm5, 1.0, %v3173_v0  ;;  %v2257_v7 = vmul.f32 %v3055_v57, %v3712_v2  ;;  %v2048_v51 = vadd.f32 %v2047_v21, %v2046_v44  ;;  %v2096_v24 = vadd.f32 %v2095_v41, %v2094_v15 }
 0x4c2   : > { %vm1990_vm6 = vcmp.eq.f32.partialorder %v3560_v46, %v2967_v25  ;;  %v2154_v12 = vadd.f32 %v2153_v62, %v2152_v61  ;;  %v2002_v52 = vmul.f32 %v2963_v32, %v3661_v28  ;;  %v2030_v63 = vmul.f32 %v2963_v32, %v1877_v56 }
 0x4c3   : > { %v2971_v47 = vsel %vm1990_vm6, 1.0, %v3173_v0  ;;  %v2085_v5 = vmul.f32 %v3681_v27, %v3580_v58  ;;  %v2187_v8 = vsub.f32 0.0, %v2183_v19  ;;  %v2058_v9 = vmul.f32 %v2963_v32, %v1897_v40 }
 0x4c4   : > { %v2114_v29 = vmul.f32 %v2971_v47, %v3645_v26  ;;  %v2074_v6 = vadd.f32 %v2073_v18, %v2072_v54  ;;  %v3761_v39 = vsel %vm2167_vm1, %v2126_v45, %v2154_v12  ;;  %v2021_v44 = vrot.slane %v2002_v52, 4 }
 0x4c5   : > { %v2049_v0 = vrot.slane %v2030_v63, 4  ;;  %v2261_v15 = vsub.f32 2.0, %v2257_v7  ;;  %v3764_v28 = vsub.f32 %v2048_v51, %v3742_v17  ;;  %v2182_v53 = vand.u32 2147483647, %v3761_v39 }
 0x4c6   : > { %v2077_v49 = vrot.slane %v2058_v9, 4  ;;  %v2097_v56 = vrot.slane %v2096_v24, 1  ;;  %v2022_v31 = vadd.f32 %v2021_v44, %v2002_v52  ;;  %v2133_v27 = vrot.slane %v2114_v29, 4 }
 0x4c7   : > { %v2050_v58 = vadd.f32 %v2049_v0, %v2030_v63  ;;  %v2193_v48 = vmul.f32 1.442695, %v2187_v8  ;;  %v2186_v1 = vsub.f32 0.0, %v2182_v53  ;;  %v2142_v54 = vmul.f32 %v2963_v32, %v3645_v26 }
 0x4c8   : > { %v2078_v34 = vadd.f32 %v2077_v49, %v2058_v9  ;;  %v3768_v20 = vpop.eup %3056  ;;  %v2075_v37 = vrot.slane %v2074_v6, 1  ;;  %v2099_v21 = vrot.slane %v2085_v5, 4  ;;  %v2023_v41 = vrot.slane %v2022_v31, 2 }
 0x4c9   : > { %v2051_v40 = vrot.slane %v2050_v58, 2  ;;  %v2265_v61 = vmul.f32 %v3055_v57, %v2261_v15  ;;  %3060 = vrcp.f32 %v3764_v28  ;;  %v2191_v19 = vmul.f32 1.442695, %v2186_v1 }
 0x4ca   : > { %v2086_v25 = vmul.f32 %v2963_v32, %v3614_v14  ;;  %v2024_v18 = vadd.f32 %v2023_v41, %v2022_v31  ;;  %v2079_v62 = vrot.slane %v2078_v34, 2  ;;  %v2134_v7 = vadd.f32 %v2133_v27, %v2114_v29 }
 0x4cb   : > { %v2052_v45 = vadd.f32 %v2051_v40, %v2050_v58  ;;  %v2197_v12 = vadd.f32 1.0, %v3768_v20  ;;  %3062 = vpow2.f32 %v2193_v48  ;;  %v2098_v26 = vadd.f32 %v2097_v56, %v2096_v24 }
 0x4cc   : > { %v3059_v51 = vpop.eup %3058  ;;  %v2161_v47 = vrot.slane %v2142_v54, 4  ;;  %3064 = vpow2.f32 %v2191_v19  ;;  %v2025_v63 = vrot.slane %v2024_v18, 1  ;;  %v3775_v8 = vsub.f32 %v2092_v59, %v3724_v50 }
 0x4cd   : > { %v2258_v52 = vmul.f32 %v3059_v51, %v3732_v4  ;;  %v2053_v57 = vrot.slane %v2052_v45, 1  ;;  %v2100_v9 = vadd.f32 %v2099_v21, %v2085_v5  ;;  %v2080_v14 = vadd.f32 %v2079_v62, %v2078_v34 }
 0x4ce   : > { %v2105_v32 = vrot.slane %v2086_v25, 4  ;;  %v3777_v0 = vadd.f32 %v2025_v63, %v2024_v18  ;;  %v2135_v15 = vrot.slane %v2134_v7, 2  ;;  %v3780_v53 = vmul.f32 %v2265_v61, %v3775_v8 }
 0x4cf   : > { %v2262_v44 = vsub.f32 2.0, %v2258_v52  ;;  %v2054_v29 = vadd.f32 %v2053_v57, %v2052_v45  ;;  %v2076_v24 = vadd.f32 %v2075_v37, %v2074_v6  ;;  %v2081_v49 = vrot.slane %v2080_v14, 1 }
 0x4d0   : > { %v2162_v56 = vadd.f32 %v2161_v47, %v2142_v54  ;;  %3066 = vlog2.f32 %v2197_v12  ;;  %v3783_v31 = vsub.f32 %v2098_v26, %v3726_v11  ;;  %v2136_v58 = vadd.f32 %v2135_v15, %v2134_v7 }
 0x4d1   : > { %v2266_v59 = vmul.f32 %v3059_v51, %v2262_v44  ;;  %v2082_v5 = vadd.f32 %v2081_v49, %v2080_v14  ;;  %v2106_v27 = vadd.f32 %v2105_v32, %v2086_v25  ;;  %v3786_v1 = vsub.f32 %v2054_v29, %v3777_v0 }
 0x4d2   : > { %v2163_v48 = vrot.slane %v2162_v56, 2  ;;  %v2137_v21 = vrot.slane %v2136_v58, 1  ;;  %v2101_v41 = vrot.slane %v2100_v9, 2  ;;  %v3794_v37 = vmul.f32 %v3780_v53, %v3775_v8 }
 0x4d3   : > { %v3789_v34 = vmul.f32 %v2266_v59, %v3783_v31  ;;  %3068 = vrcp.f32 %v3786_v1  ;;  %v2278_v54 = vcombine.low %v2076_v24, %v2082_v5  ;;  %v3800_v40 = vrot.slane %v2277_v13, %v3648_v30 }
 0x4d4   : > { %v2164_v6 = vadd.f32 %v2163_v48, %v2162_v56  ;;  %v2107_v19 = vrot.slane %v2106_v27, 2  ;;  %v2138_v25 = vadd.f32 %v2137_v21, %v2136_v58  ;;  %v2102_v51 = vadd.f32 %v2101_v41, %v2100_v9 }
 0x4d5   : > { %v3804_v61 = vmul.f32 %v3789_v34, %v3783_v31  ;;  %v3809_v7 = vrot.slane %v2278_v54, %v3648_v30  ;;  %v2200_v63 = vmul.f32 -0.5, %v3768_v20  ;;  %v2203_v59 = vand.u32 2147483647, %v3768_v20 }
 0x4d6   : > { %v2165_v18 = vrot.slane %v2164_v6, 1  ;;  %v3061_v45 = vpop.eup %3060  ;;  %v2108_v47 = vadd.f32 %v2107_v19, %v2106_v27  ;;  %v2103_v14 = vrot.slane %v2102_v51, 1 }
 0x4d7   : > { %v2369_v62 = vcombine.low %v3794_v37, %v3804_v61  ;;  %v2293_v50 = vcombine.low %v3800_v40, %v3809_v7  ;;  %v2259_v13 = vmul.f32 %v3061_v45, %v3764_v28  ;;  %v2201_v56 = vadd.f32 1.0, %v2200_v63 }
 0x4d8   : > { %v2166_v12 = vadd.f32 %v2165_v18, %v2164_v6  ;;  %v3811_v26 = vpop.eup %3062  ;;  %v2109_v15 = vrot.slane %v2108_v47, 1  ;;  %v2104_v58 = vadd.f32 %v2103_v14, %v2102_v51  ;;  %vm2204_vm2 = vcmp.lt.f32.partialorder %v2203_v59, 0.0004427343 }
 0x4d9   : > { %v3065_v11 = vpop.eup %3064  ;;  %v2215_v9 = vadd.f32 1.0, %v3811_v26  ;;  %v2263_v29 = vsub.f32 2.0, %v2259_v13  ;;  %v2202_v37 = vmul.f32 %v3768_v20, %v2201_v56  ;;  %v3846_v59 = vrot.slane %v2369_v62, %v3648_v30 }
 0x4da   : > { %v3817_v52 = vsel %vm2167_vm1, %v2138_v25, %v2166_v12  ;;  %v2206_v57 = vadd.f32 1.0, %v3065_v11  ;;  %v2110_v6 = vadd.f32 %v2109_v15, %v2108_v47  ;;  %v2209_v61 = vmul.f32 -0.5, %v3065_v11 }
 0x4db   : > { %v2184_v32 = vand.u32 2147483647, %v3817_v52  ;;  %v2267_v41 = vmul.f32 %v3061_v45, %v2263_v29  ;;  %v3825_v19 = vsub.f32 %v2104_v58, %v2076_v24  ;;  %v2177_v12 = vmax.f32 %v3706_v55, 0.0 }
 0x4dc   : > { %3070 = vlog2.f32 %v2206_v57  ;;  %v3831_v13 = vsub.f32 %v2110_v6, %v2082_v5  ;;  %v2210_v47 = vadd.f32 1.0, %v2209_v61  ;;  %v2212_v57 = vand.u32 2147483647, %v3065_v11 }
 0x4dd   : > { %v3067_v44 = vpop.eup %3066  ;;  %v2188_v49 = vsub.f32 0.0, %v2184_v32  ;;  %3072 = vlog2.f32 %v2215_v9  ;;  %v3829_v51 = vmul.f32 %v2267_v41, %v3825_v19  ;;  %v3841_v55 = vmul.f32 7.0, %v3560_v46 }
 0x4de   : > { %v2199_v21 = vmul.f32 0.6931472, %v3067_v44  ;;  %v2178_v5 = vmax.f32 %v3761_v39, 0.0  ;;  %v2211_v44 = vmul.f32 %v3065_v11, %v2210_v47  ;;  %v2218_v15 = vmul.f32 -0.5, %v3811_v26 }
 0x4df   : > { %v2195_v27 = vmul.f32 1.442695, %v2188_v49  ;;  %v2363_v24 = vmul.f32 %v3829_v51, %v3825_v19  ;;  %vm2213_vm7 = vcmp.lt.f32.partialorder %v2212_v57, 0.0004427343  ;;  %vm2173_vm8 = vcmp.eq.f32.partialorder %v3602_v16, %v3841_v55 }
 0x4e0   : > { %v3069_v48 = vpop.eup %3068  ;;  %v2205_v18 = vsel %vm2204_vm2, %v2202_v37, %v2199_v21  ;;  %v2219_v11 = vadd.f32 1.0, %v2218_v15  ;;  %v2221_v6 = vand.u32 2147483647, %v3811_v26  ;;  %vm2174_vm9 = vcmp.eq.f32.partialorder %v3677_v22, %v3841_v55 }
 0x4e1   : > { %3074 = vpow2.f32 %v2195_v27  ;;  %v2260_v54 = vmul.f32 %v3069_v48, %v3786_v1  ;;  %v2233_v63 = vadd.f32 %v2205_v18, %v2177_v12  ;;  %v2179_v12 = vmax.f32 %v3729_v3, 0.0 }
 0x4e2   : > { %vm2222_vm10 = vcmp.lt.f32.partialorder %v2221_v6, 0.0004427343  ;;  %vm2175_vm11 = vcmp.eq.f32.partialorder %v3625_v60, %v3841_v55  ;;  %v2300_v3 = vrot.slane %v2293_v50, %v3648_v30  ;;  %v2450_v40 = vsub.f32 0.0, %v3780_v53 }
 0x4e3   : > { %v2264_v25 = vsub.f32 2.0, %v2260_v54  ;;  %v2237_v29 = vadd.f32 0.001, %v2233_v63  ;;  %v3897_v7 = vmul.f32 2.0, %v3829_v51  ;;  %vm2176_vm13 = vcmp.eq.f32.partialorder %v3737_v43, %v3841_v55 }
 0x4e4   : > { %v2452_v43 = vsub.f32 0.0, %v3829_v51 }
 0x4e5   : > { %v2268_v45 = vmul.f32 %v3069_v48, %v2264_v25  ;;  %v3853_v39 = vsel %vm2173_vm8, 1.0, %v2237_v29  ;;  %v2220_v25 = vmul.f32 %v3811_v26, %v2219_v11  ;;  %v2451_v11 = vsub.f32 0.0, %v3789_v34 }
 0x4e6   : > { %v3864_v16 = vmul.f32 %v3775_v8, %v3853_v39 }
 0x4e7   : > { %v3834_v14 = vmul.f32 %v2268_v45, %v3831_v13 }
 0x4e9   : > { %v3071_v20 = vpop.eup %3070  ;;  %v2364_v32 = vmul.f32 %v3834_v14, %v3831_v13  ;;  %v3919_v55 = vmul.f32 2.0, %v3834_v14 }
 0x4ea   : > { %v2208_v9 = vmul.f32 0.6931472, %v3071_v20  ;;  %v3073_v58 = vpop.eup %3072 }
 0x4eb   : > { %v2370_v49 = vcombine.low %v2363_v24, %v2364_v32  ;;  %v2217_v54 = vmul.f32 0.6931472, %v3073_v58  ;;  %v3892_v58 = vmul.f32 2.0, %v3780_v53 }
 0x4ec   : > { %v2214_v56 = vsel %vm2213_vm7, %v2211_v44, %v2208_v9  ;;  %v2180_v9 = vmax.f32 %v3817_v52, 0.0 }
 0x4ed   : > { %v2234_v27 = vadd.f32 %v2214_v56, %v2178_v5  ;;  %v3849_v48 = vrot.slane %v2370_v49, %v3648_v30  ;;  %v2223_v18 = vsel %vm2222_vm10, %v2220_v25, %v2217_v54  ;;  %v3889_v56 = vmul.f32 2.0, %v3789_v34 }
 0x4ee   : > { %v3075_v46 = vpop.eup %3074  ;;  %v2235_v47 = vadd.f32 %v2223_v18, %v2179_v12 }
 0x4ef   : > { %v2238_v21 = vadd.f32 0.001, %v2234_v27  ;;  %v2224_v41 = vadd.f32 1.0, %v3075_v46  ;;  %v2385_v62 = vcombine.low %v3846_v59, %v3849_v48  ;;  %v2227_v45 = vmul.f32 -0.5, %v3075_v46 }
 0x4f0   : > { %v2239_v57 = vadd.f32 0.001, %v2235_v47  ;;  %v2230_v20 = vand.u32 2147483647, %v3075_v46  ;;  %v2302_v27 = vsub.f32 %v3544_v33, %v2300_v3  ;;  %v2453_v33 = vsub.f32 0.0, %v3834_v14 }
 0x4f1   : > { %v3860_v37 = vsel %vm2174_vm9, 1.0, %v2238_v21  ;;  %3076 = vlog2.f32 %v2224_v41  ;;  %v2228_v63 = vadd.f32 1.0, %v2227_v45 }
 0x4f2   : > { %v3868_v61 = vmul.f32 %v3783_v31, %v3860_v37  ;;  %v2308_v8 = vrot.slane %v3860_v37, 1  ;;  %v2307_v31 = vrot.slane %v3853_v39, 1  ;;  %v3878_v5 = vsel %vm2175_vm11, 1.0, %v2239_v57 }
 0x4f3   : > { %v2229_v32 = vmul.f32 %v3075_v46, %v2228_v63  ;;  %vm2231_vm12 = vcmp.lt.f32.partialorder %v2230_v20, 0.0004427343  ;;  %v2309_v60 = vrot.slane %v3878_v5, 1  ;;  %v2359_v6 = vmul.f32 %v3825_v19, %v3878_v5 }
 0x4f4   : > { %v2399_v22 = vcombine.low %v3864_v16, %v3868_v61  ;;  %v2316_v44 = vadd.f32 %v2308_v8, %v3860_v37  ;;  %v2315_v15 = vadd.f32 %v2307_v31, %v3853_v39  ;;  %v2462_v18 = vrot.slane %v2302_v27, %v3557_v42 }
 0x4f5   : > { %v2317_v41 = vadd.f32 %v2309_v60, %v3878_v5  ;;  %v2470_v12 = vrot.slane %v2302_v27, %v3598_v35  ;;  %v2458_v57 = vrot.slane %v2302_v27, %v3549_v36 }
 0x4f6   : > { %v3900_v50 = vsub.f32 %v2316_v44, %v3889_v56  ;;  %v3905_v46 = vsub.f32 %v2315_v15, %v3892_v58  ;;  %v2407_v47 = vrot.slane %v2399_v22, %v3648_v30  ;;  %v3929_v20 = vmul.f32 %v2462_v18, %v2451_v11 }
 0x4f7   : > { %v3931_v8 = vmul.f32 %v2470_v12, %v2453_v33  ;;  %v3940_v22 = vmul.f32 %v2458_v57, %v2450_v40 }
 0x4f8   : > { %v2331_v45 = vcombine.low %v3905_v46, %v3900_v50 }
 0x4fe   : > { %v3077_v24 = vpop.eup %3076 }
 0x4ff   : > { %v2226_v26 = vmul.f32 0.6931472, %v3077_v24  ;;  %v3934_v24 = vsub.f32 %v2317_v41, %v3897_v7  ;;  %v2392_v41 = vrot.slane %v2385_v62, %v3648_v30 }
 0x501   : > { %v2232_v29 = vsel %vm2231_vm12, %v2229_v32, %v2226_v26 }
 0x502   : > { %v2236_v49 = vadd.f32 %v2232_v29, %v2180_v9  ;;  %v2339_v9 = vrot.slane %v2331_v45, %v3648_v30  ;;  %v2488_v29 = vcombine.low %v3940_v22, %v3929_v20 }
 0x504   : > { %v2240_v52 = vadd.f32 0.001, %v2236_v49 }
 0x506   : > { %v3908_v21 = vsel %vm2176_vm13, 1.0, %v2240_v52  ;;  %v2496_v52 = vrot.slane %v2488_v29, %v3648_v30 }
 0x507   : > { %v2310_v54 = vrot.slane %v3908_v21, 1  ;;  %v2360_v25 = vmul.f32 %v3831_v13, %v3908_v21  ;;  %v2466_v13 = vrot.slane %v2302_v27, %v3554_v38 }
 0x509   : > { %v2318_v19 = vadd.f32 %v2310_v54, %v3908_v21  ;;  %v2400_v63 = vcombine.low %v2359_v6, %v2360_v25  ;;  %v3942_v32 = vmul.f32 %v2466_v13, %v2452_v43 }
 0x50b   : > { %v3937_v31 = vsub.f32 %v2318_v19, %v3919_v55  ;;  %v2414_v26 = vrot.slane %v2400_v63, %v3648_v30  ;;  %v2489_v15 = vcombine.low %v3942_v32, %v3931_v8 }
 0x50d   : > { %v2332_v3 = vcombine.low %v3934_v24, %v3937_v31  ;;  %v2415_v44 = vcombine.low %v2407_v47, %v2414_v26  ;;  %v2503_v40 = vrot.slane %v2489_v15, %v3648_v30 }
 0x50f   : > { %v2346_v49 = vrot.slane %v2332_v3, %v3648_v30  ;;  %v2422_v54 = vrot.slane %v2415_v44, %v3648_v30  ;;  %v2504_v43 = vcombine.low %v2496_v52, %v2503_v40 }
 0x511   : > { %v2347_v60 = vcombine.low %v2339_v9, %v2346_v49  ;;  %v2511_v62 = vrot.slane %v2504_v43, %v3648_v30 }
 0x513   : > { %v2354_v11 = vrot.slane %v2347_v60, %v3648_v30 }
 0x515   : > { %v2356_v33 = vmul.f32 %v2354_v11, %v2302_v27 }
 0x517   : > { %v2394_v18 = vadd.f32 %v2392_v41, %v2356_v33  ;;  %v2429_v12 = vrot.slane %v2356_v33, %v3549_v36  ;;  %v2433_v45 = vrot.slane %v2356_v33, %v3557_v42  ;;  %v2437_v47 = vrot.slane %v2356_v33, %v3554_v38 }
 0x518   : > { %v2441_v19 = vrot.slane %v2356_v33, %v3598_v35 }
 0x519   : > { %v2424_v63 = vsub.f32 %v2394_v18, %v2422_v54  ;;  %v2446_v27 = vsub.f32 %v3864_v16, %v2429_v12  ;;  %v2447_v57 = vsub.f32 %v3868_v61, %v2433_v45  ;;  %v2448_v13 = vsub.f32 %v2359_v6, %v2437_v47 }
 0x51a   : > { %v2449_v59 = vsub.f32 %v2360_v25, %v2441_v19 }
 0x51b   : > { %v2483_v48 = vmul.f32 4.0, %v2424_v63  ;;  %v2479_v9 = vmul.f32 %v2446_v27, %v2446_v27  ;;  %v2480_v3 = vmul.f32 %v2447_v57, %v2447_v57  ;;  %v2481_v44 = vmul.f32 %v2448_v13, %v2448_v13 }
 0x51c   : > { %v2482_v29 = vmul.f32 %v2449_v59, %v2449_v59  ;;  %v2547_v54 = vsub.f32 0.0, %v2446_v27  ;;  %v2548_v43 = vsub.f32 0.0, %v2447_v57  ;;  %v2550_v18 = vsub.f32 0.0, %v2449_v59 }
 0x51d   : > { %v2513_v26 = vmul.f32 %v2511_v62, %v2483_v48 }
 0x51f   : > { %v2518_v15 = vrot.slane %v2513_v26, %v3549_v36  ;;  %v2522_v49 = vrot.slane %v2513_v26, %v3557_v42  ;;  %v2526_v60 = vrot.slane %v2513_v26, %v3554_v38  ;;  %v2530_v16 = vrot.slane %v2513_v26, %v3598_v35 }
 0x520   : > { %v2549_v42 = vsub.f32 0.0, %v2448_v13 }
 0x521   : > { %v2535_v52 = vsub.f32 %v2479_v9, %v2518_v15  ;;  %v2536_v61 = vsub.f32 %v2480_v3, %v2522_v49  ;;  %v2537_v6 = vsub.f32 %v2481_v44, %v2526_v60  ;;  %v2538_v25 = vsub.f32 %v2482_v29, %v2530_v16 }
 0x523   : > { %v2539_v40 = vmax.f32 %v2535_v52, 0.0  ;;  %v2540_v11 = vmax.f32 %v2536_v61, 0.0  ;;  %v2541_v33 = vmax.f32 %v2537_v6, 0.0  ;;  %v2542_v41 = vmax.f32 %v2538_v25, 0.0 }
 0x524   : > { %v2543_v61 = vmul.f32 2.0, %v3940_v22  ;;  %v2544_v25 = vmul.f32 2.0, %v3929_v20 }
 0x525   : > { %3078 = vrsqrt.f32 %v2539_v40  ;;  %vm2567_vm14 = vcmp.eq.f32.partialorder %v2541_v33, inf  ;;  %vm2569_vm15 = vcmp.eq.f32.partialorder %v2541_v33, 0.0  ;;  %v2570_v35 = vand.u32 2147483648, %v2541_v33 }
 0x526   : > { %3080 = vrsqrt.f32 %v2540_v11  ;;  %vm2574_vm0 = vcmp.eq.f32.partialorder %v2542_v41, inf  ;;  %vm2553_vm1 = vcmp.eq.f32.partialorder %v2539_v40, inf  ;;  %vm2555_vm3 = vcmp.eq.f32.partialorder %v2539_v40, 0.0 }
 0x527   : > { %3082 = vrsqrt.f32 %v2541_v33  ;;  %v2556_v47 = vand.u32 2147483648, %v2539_v40  ;;  %vm2560_vm4 = vcmp.eq.f32.partialorder %v2540_v11, inf  ;;  %v2563_v27 = vand.u32 2147483648, %v2540_v11 }
 0x528   : > { %3084 = vrsqrt.f32 %v2542_v41  ;;  %vm2562_vm5 = vcmp.eq.f32.partialorder %v2540_v11, 0.0  ;;  %v2577_v9 = vand.u32 2147483648, %v2542_v41  ;;  %vm2576_vm6 = vcmp.eq.f32.partialorder %v2542_v41, 0.0 }
 0x532   : > { %v3079_v36 = vpop.eup %3078 }
 0x533   : > { %v3081_v38 = vpop.eup %3080  ;;  %v2552_v12 = vmul.f32 %v3079_v36, %v2539_v40 }
 0x534   : > { %v3083_v45 = vpop.eup %3082  ;;  %v2559_v19 = vmul.f32 %v3081_v38, %v2540_v11 }
 0x535   : > { %v3085_v63 = vpop.eup %3084  ;;  %v2566_v48 = vmul.f32 %v3083_v45, %v2541_v33  ;;  %v2554_v62 = vsel %vm2553_vm1, %v2539_v40, %v2552_v12 }
 0x536   : > { %v2573_v26 = vmul.f32 %v3085_v63, %v2542_v41  ;;  %v2557_v57 = vsel %vm2555_vm3, %v2556_v47, %v2554_v62  ;;  %v2561_v13 = vsel %vm2560_vm4, %v2540_v11, %v2559_v19  ;;  %v2545_v11 = vmul.f32 2.0, %v3942_v32 }
 0x537   : > { %v2568_v59 = vsel %vm2567_vm14, %v2541_v33, %v2566_v48  ;;  %v2564_v3 = vsel %vm2562_vm5, %v2563_v27, %v2561_v13  ;;  %v2579_v44 = vsub.f32 %v2547_v54, %v2557_v57 }
 0x538   : > { %v2571_v29 = vsel %vm2569_vm15, %v2570_v35, %v2568_v59  ;;  %v2575_v15 = vsel %vm2574_vm0, %v2542_v41, %v2573_v26  ;;  %v2580_v49 = vsub.f32 %v2548_v43, %v2564_v3  ;;  %v2546_v41 = vmul.f32 2.0, %v3931_v8 }
 0x539   : > { %v2578_v60 = vsel %vm2576_vm6, %v2577_v9, %v2575_v15  ;;  %v2581_v16 = vsub.f32 %v2549_v42, %v2571_v29  ;;  %3086 = vrcp.f32 %v2579_v44  ;;  %v2618_v26 = vmul.f32 %v3834_v14, %v3834_v14 }
 0x53a   : > { %v2582_v52 = vsub.f32 %v2550_v18, %v2578_v60  ;;  %3088 = vrcp.f32 %v2580_v49 }
 0x53b   : > { %3090 = vrcp.f32 %v2581_v16 }
 0x53c   : > { %3092 = vrcp.f32 %v2582_v52 }
 0x546   : > { %v3087_v6 = vpop.eup %3086 }
 0x547   : > { %v3089_v40 = vpop.eup %3088  ;;  %v2584_v33 = vmul.f32 %v3087_v6, %v2543_v61 }
 0x548   : > { %v3091_v54 = vpop.eup %3090  ;;  %v2586_v36 = vmul.f32 %v3089_v40, %v2544_v25 }
 0x549   : > { %v3093_v43 = vpop.eup %3092  ;;  %v2588_v42 = vmul.f32 %v3091_v54, %v2545_v11  ;;  %v2599_v18 = vsub.f32 1.0, %v2584_v33  ;;  %v2591_v22 = vmul.f32 %v2584_v33, %v3712_v2  ;;  %v2623_v32 = vrot.slane %v2584_v33, 7 }
 0x54a   : > { %v2590_v38 = vmul.f32 %v3093_v43, %v2546_v41  ;;  %v2600_v35 = vsub.f32 1.0, %v2586_v36  ;;  %v2592_v20 = vmul.f32 %v2586_v36, %v3732_v4  ;;  %v2624_v63 = vrot.slane %v2586_v36, 7 }
 0x54b   : > { %v2601_v47 = vsub.f32 1.0, %v2588_v42  ;;  %v2593_v19 = vmul.f32 %v2588_v42, %v3764_v28  ;;  %v3988_v57 = vmul.f32 %v2599_v18, %v2584_v33  ;;  %v2625_v4 = vrot.slane %v2588_v42, 7 }
 0x54c   : > { %v2602_v12 = vsub.f32 1.0, %v2590_v38  ;;  %v2626_v45 = vrot.slane %v2590_v38, 7  ;;  %v2594_v27 = vmul.f32 %v2590_v38, %v3786_v1  ;;  %v3990_v2 = vmul.f32 %v2600_v35, %v2586_v36 }
 0x54d   : > { %v2595_v59 = vadd.f32 %v2591_v22, %v3698_v23  ;;  %v3995_v9 = vmul.f32 %v2601_v47, %v2588_v42  ;;  %v2597_v1 = vadd.f32 %v2593_v19, %v3742_v17  ;;  %v2631_v3 = vmul.f32 %v2623_v32, %v3853_v39 }
 0x54e   : > { %v3981_v48 = vmul.f32 %v2602_v12, %v2590_v38  ;;  %v2634_v8 = vmul.f32 %v2626_v45, %v3908_v21  ;;  %v2662_v62 = vmul.f32 %v2602_v12, %v3908_v21  ;;  %v2596_v21 = vadd.f32 %v2592_v20, %v3720_v10 }
 0x54f   : > { %v2632_v44 = vmul.f32 %v2624_v63, %v3860_v37  ;;  %v2598_v49 = vadd.f32 %v2594_v27, %v3777_v0  ;;  %v2633_v60 = vmul.f32 %v2625_v4, %v3878_v5  ;;  %v2635_v16 = vmul.f32 %v2631_v3, %v2623_v32 }
 0x550   : > { %v2642_v28 = vmul.f32 %v3981_v48, %v3919_v55  ;;  %v2666_v13 = vmul.f32 %v2662_v62, %v2602_v12  ;;  %v2638_v29 = vmul.f32 %v2634_v8, %v2626_v45  ;;  %v2639_v23 = vmul.f32 %v3988_v57, %v3892_v58 }
 0x551   : > { %v2640_v10 = vmul.f32 %v3990_v2, %v3889_v56  ;;  %v2636_v17 = vmul.f32 %v2632_v44, %v2624_v63  ;;  %v2641_v61 = vmul.f32 %v3995_v9, %v3897_v7  ;;  %v2659_v6 = vmul.f32 %v2599_v18, %v3853_v39 }
 0x552   : > { %v2650_v15 = vrot.slane %v2642_v28, 7  ;;  %v2674_v55 = vrot.slane %v2666_v13, 7  ;;  %v2647_v25 = vrot.slane %v2639_v23, 7  ;;  %v2660_v0 = vmul.f32 %v2600_v35, %v3860_v37 }
 0x553   : > { %v2648_v40 = vrot.slane %v2640_v10, 7  ;;  %v2661_v11 = vmul.f32 %v2601_v47, %v3878_v5  ;;  %v2637_v54 = vmul.f32 %v2633_v60, %v2625_v4  ;;  %v2649_v41 = vrot.slane %v2641_v61, 7 }
 0x554   : > { %v2658_v52 = vadd.f32 %v2650_v15, %v2638_v29  ;;  %v2663_v58 = vmul.f32 %v2659_v6, %v2599_v18  ;;  %v2655_v36 = vadd.f32 %v2647_v25, %v2635_v16  ;;  %v2664_v43 = vmul.f32 %v2660_v0, %v2600_v35 }
 0x555   : > { %v2656_v56 = vadd.f32 %v2648_v40, %v2636_v17  ;;  %v2665_v42 = vmul.f32 %v2661_v11, %v2601_v47  ;;  %v2657_v38 = vadd.f32 %v2649_v41, %v2637_v54  ;;  %v2615_v39 = vmul.f32 %v3780_v53, %v3780_v53  ;;  %v3110_v47 = vld [vmem:[%s3527_s16] sm:$0xf]  ;;  %s4059_s16 = scalar_lea.hbm %s4110_s12, %s2977_s26 }
 0x556   : > { %v2682_v33 = vadd.f32 %v2674_v55, %v2658_v52  ;;  %v2671_v12 = vrot.slane %v2663_v58, 7  ;;  %v2617_v37 = vmul.f32 %v3829_v51, %v3829_v51  ;;  %v2672_v45 = vrot.slane %v2664_v43, 7 }
 0x557   : > { %v2673_v5 = vrot.slane %v2665_v42, 7  ;;  %v2735_v20 = vcombine.low %v2595_v59, %v2596_v21  ;;  %v2736_v18 = vcombine.low %v2597_v1, %v2598_v49  ;;  %v2616_v35 = vmul.f32 %v3789_v34, %v3789_v34 }
 0x558   : > { %v2686_v7 = vmul.f32 %v2682_v33, %v2618_v26  ;;  %v2679_v22 = vadd.f32 %v2671_v12, %v2655_v36  ;;  %vm1902_vm2 = vcmp.ge.f32.partialorder %v3110_v47, -5.0  ;;  %v2680_v19 = vadd.f32 %v2672_v45, %v2656_v56 }
 0x559   : > { %v2681_v32 = vadd.f32 %v2673_v5, %v2657_v38  ;;  %vm1903_vm7 = vcmp.le.f32.partialorder %v3110_v47, 5.0  ;;  %v2743_v8 = vrot.slane %v2735_v20, %v3648_v30  ;;  %v2750_v62 = vrot.slane %v2736_v18, %v3648_v30 }
 0x55a   : > { %3094 = vrcp.f32 %v2686_v7  ;;  %v2683_v63 = vmul.f32 %v2679_v22, %v2615_v39  ;;  %v2684_v27 = vmul.f32 %v2680_v19, %v2616_v35  ;;  %vm4021_vm8 = vmand %vm1902_vm2, %vm1903_vm7  ;;  %v4123_v59 = vlaneseq }
 0x55b   : > { %v2685_v26 = vmul.f32 %v2681_v32, %v2617_v37  ;;  %v2751_v4 = vcombine.low %v2743_v8, %v2750_v62  ;;  %v2610_v3 = vmul.f32 %v3981_v48, %v3937_v31  ;;  %v2607_v15 = vmul.f32 %v3988_v57, %v3905_v46 }
 0x55c   : > { %3096 = vrcp.f32 %v2683_v63  ;;  %vm4031_vm9 = vcmp.lt.s32.totalorder %v4123_v59, 512  ;;  %v2608_v16 = vmul.f32 %v3990_v2, %v3900_v50  ;;  %v2609_v10 = vmul.f32 %v3995_v9, %v3934_v24 }
 0x55d   : > { %3098 = vrcp.f32 %v2684_v27  ;;  %v2758_v13 = vrot.slane %v2751_v4, %v3648_v30  ;;  %v2614_v49 = vadd.f32 %v2610_v3, %v3834_v14  ;;  %v2611_v31 = vadd.f32 %v2607_v15, %v3780_v53 }
 0x55e   : > { %3100 = vrcp.f32 %v2685_v26  ;;  %v2612_v14 = vadd.f32 %v2608_v16, %v3789_v34  ;;  %v2613_v0 = vadd.f32 %v2609_v10, %v3829_v51 }
 0x55f   : > { %v2760_v1 = vsel %vm4021_vm8, %v2758_v13, %v3110_v47  ;;  %v2690_v6 = vmul.f32 %v2614_v49, %v2614_v49  ;;  %v2687_v24 = vmul.f32 %v2611_v31, %v2611_v31 }
 0x560   : > { %2765 = vst.msk [vmem:[%s443_s19] sm:$0xf] %vm4031_vm9, %v2760_v1  ;;  %v2688_v41 = vmul.f32 %v2612_v14, %v2612_v14  ;;  %v2689_v58 = vmul.f32 %v2613_v0, %v2613_v0  ;;  %s3115_s19 = sshll.u32 %s3176_s25, 4  ;;  %s3116_s19 = int_to_ptr.vmem [resolvable:$false] %s3115_s19 }
 0x561   : > { %s3117_s20 = scalar_lea.vmem %s3116_s19, 128  ;;  %p3118_p0 = scmp.lt.s32.totalorder %s2821_s28, %s3116_s19 }
 0x562   : > { %p3119_p1 = scmp.lt.s32.totalorder %s3117_s20, %s3111_s18 }
 0x564   : > { %p3120_p2 = por %p3119_p1, %p3118_p0 }
 0x566   : > { %p3121_p3 = pnand %p3120_p2, %p3114_p13 }
 0x567   : > { %v3095_v44 = vpop.eup %3094 }
 0x568   : > { %v2698_v29 = vmul.f32 %v3095_v44, %v2686_v7 }
 0x569   : > { %v3097_v55 = vpop.eup %3096 }
 0x56a   : > { %v2702_v60 = vsub.f32 2.0, %v2698_v29  ;;  %v3099_v23 = vpop.eup %3098  ;;  %v2695_v52 = vmul.f32 %v3097_v55, %v2683_v63 }
 0x56b   : > { %v3101_v61 = vpop.eup %3100  ;;  %v2696_v48 = vmul.f32 %v3099_v23, %v2684_v27 }
 0x56c   : > { %v2706_v17 = vmul.f32 %v3095_v44, %v2702_v60  ;;  %v2697_v25 = vmul.f32 %v3101_v61, %v2685_v26  ;;  %v2699_v46 = vsub.f32 2.0, %v2695_v52 }
 0x56d   : > { %v2700_v40 = vsub.f32 2.0, %v2696_v48 }
 0x56e   : > { %v2714_v57 = vrot.slane %v2706_v17, 1  ;;  %v2701_v50 = vsub.f32 2.0, %v2697_v25  ;;  %v2703_v2 = vmul.f32 %v3097_v55, %v2699_v46 }
 0x56f   : > { %v2704_v33 = vmul.f32 %v3099_v23, %v2700_v40 }
 0x570   : > { %v2722_v11 = vmul.f32 %v2714_v57, %v2690_v6  ;;  %v2705_v9 = vmul.f32 %v3101_v61, %v2701_v50  ;;  %v2711_v54 = vrot.slane %v2703_v2, 1 }
 0x571   : > { %v2712_v53 = vrot.slane %v2704_v33, 1 }
 0x572   : > { %v2713_v36 = vrot.slane %v2705_v9, 1  ;;  %v2719_v56 = vmul.f32 %v2711_v54, %v2687_v24  ;;  %3102 = vlog2.f32 %v2722_v11 }
 0x573   : > { %v2720_v43 = vmul.f32 %v2712_v53, %v2688_v41 }
 0x574   : > { %v2721_v42 = vmul.f32 %v2713_v36, %v2689_v58  ;;  %3104 = vlog2.f32 %v2719_v56 }
 0x575   : > { %3106 = vlog2.f32 %v2720_v43 }
 0x576   : > { %3108 = vlog2.f32 %v2721_v42 }
 0x57f   : > { %v3103_v34 = vpop.eup %3102 }
 0x580   : > { %v2730_v7 = vmul.f32 0.6931472, %v3103_v34 }
 0x581   : > { %v3105_v51 = vpop.eup %3104 }
 0x582   : > { %v3107_v38 = vpop.eup %3106  ;;  %v2724_v12 = vmul.f32 0.6931472, %v3105_v51 }
 0x583   : > { %v3109_v39 = vpop.eup %3108  ;;  %v2726_v37 = vmul.f32 0.6931472, %v3107_v38 }
 0x584   : > { %v2728_v45 = vmul.f32 0.6931472, %v3109_v39 }
 0x585   : > { %v2770_v5 = vcombine.low %v2724_v12, %v2726_v37 }
 0x586   : > { %v2771_v22 = vcombine.low %v2728_v45, %v2730_v7 }
 0x587   : > { %v2778_v20 = vrot.slane %v2770_v5, %v3648_v30 }
 0x588   : > { %v2785_v18 = vrot.slane %v2771_v22, %v3648_v30 }
 0x58a   : > { %v2786_v35 = vcombine.low %v2778_v20, %v2785_v18 }
 0x58c   : > { %v2793_v47 = vrot.slane %v2786_v35, %v3648_v30 }
 0x58e   : > { %v2795_v19 = vsel %vm4021_vm8, %v2793_v47, 0.0 }
 0x58f   : > { %2796 = vst.msk [vmem:[%s428_s30] sm:$0xf] %vm4031_vm9, %v2795_v19 }
 0x590   : > { %3124 = shalt.err (!%p3121_p3)
}
 0x591   : > { %s3125_s26 = scalar_lea.hbm %s4059_s16, 64  ;;  %s3129_s29 = scalar_lea.hbm %s4110_s12, 128 }
 0x592   : > { %p3126_p4 = scmp.ne.s32.totalorder %s4059_s16, %s3125_s26  ;;  %p3130_p9 = scmp.lt.s32.totalorder %s4059_s16, %s4110_s12 }
 0x593   : > { %p3131_p10 = scmp.lt.s32.totalorder %s3129_s29, %s3125_s26 }
 0x594   : > { %p3127_p7 = pnand %p3126_p4, %p3280_p5 }
 0x595   : > { %p3132_p11 = por %p3131_p10, %p3130_p9 }
 0x596   : > { %p3128_p8 = pneg %p3127_p7 }
 0x598   : > { %p3133_p12 = pnand %p3132_p11, %p3128_p8 }
 0x59a   : > { %3136 = shalt.err (!%p3133_p12)
}
 0x59b   : > { %2978 = dma.vmem_to_hbm [thread:$0]  (%p3280_p5), %s2821_s28, 64, %s4059_s16, %s2802_s17  }
 0x59c PF: > { %p2984_p13 = scmp.ge.s32.totalorder %s3171_s24, 2  ;;  %s2839_s18 = sand.u32 1, %s3159_s21  }
 0x59d   : > { %s2840_s19 = scalar_lea.sflag [#allocation3], %s2839_s18 }
 0x59e   : > { %p2981_p0 = pnand %p2984_p13, %p3284_p6 }
 0x5a0   : > { %p2982_p1 = pneg %p2981_p0 }
 0x5a2   : > { %3154 = dma.done.wait (%p2982_p1), %s2840_s19, 64  }
 0x5a3   : > { %3156 = vsyncadd (%p2982_p1), %s2840_s19, 4294967232  ;;  %s4126_s20 = sld [smem:[#allocation5_spill]]  ;;  %p23_p2 = scmp.ge.s32.totalorder %s3267_s27, 4  }
 0x5a4   : > { %s4127_s23 = sld [smem:[#allocation6_spill]]  ;;  %s4128_s21 = smov %s3163_s22 }
 0x5a5   : > { %s4130_s24 = smov %s3267_s27  ;;  %25 = sbr.rel (!%p23_p2) target bundleno = 3 (0x3), region = 114 }
 0x5a9   : > { %s4129_s22 = smov %s4126_s20 }
 0x5aa   :  { %2845 = vsyncpa [#allocation3], 1 }
 0x5ab   :  { %2847 = vsyncpa [#allocation3 + $0x1], 1 }

</bundles_post_ra>
